<compile_context>
chip_gen: v7x
topology: tpu7x:2x2x1
jax: 0.10.0
libtpu: 0.0.40
codegen_flags: <defaults>
</compile_context>

<pallas_src>
import functools

import jax
import jax.numpy as jnp
from jax.experimental import pallas as pl
from jax.experimental.pallas import tpu as pltpu

# ---------------- model hyper-parameters (small, consistent with forward) ---
D_MODEL = 32
N_HEAD = 4
HEAD_DIM = D_MODEL // N_HEAD
D_FF = 64
N_LAYER = 2
EPS = 1e-5

PARAM_ORDER = ("w_in", "b_in", "w_out", "b_out", "g1", "be1",
               "w1", "b1", "w2", "b2", "g2", "be2")


# ----------------------------- kernel helpers --------------------------------
def _add_layernorm_t(x, r, gamma, beta):
    """LayerNorm(x + r) over the FEATURE axis (= axis 0 in (D, S) layout)."""
    y = x + r                                              # f32
    mu = jnp.mean(y, axis=0, keepdims=True)                # (1, S)
    var = jnp.mean((y - mu) ** 2, axis=0, keepdims=True)   # (1, S)
    return (y - mu) * jax.lax.rsqrt(var + EPS) * gamma + beta   # gamma/beta (D,1)


# ----------------------------- fused kernel ----------------------------------
def _encoder_stack_kernel(*refs, nlayer, nhead, use_mask):
    """All layers for one batch element, fully VMEM/vreg resident."""
    if use_mask:
        (mask_ref, x_ref, w_in_ref, b_in_ref, w_out_ref, b_out_ref,
         g1_ref, be1_ref, w1_ref, b1_ref, w2_ref, b2_ref,
         g2_ref, be2_ref, o_ref) = refs
    else:
        (x_ref, w_in_ref, b_in_ref, w_out_ref, b_out_ref,
         g1_ref, be1_ref, w1_ref, b1_ref, w2_ref, b2_ref,
         g2_ref, be2_ref, o_ref) = refs
        mask_ref = None

    _, d, s = x_ref.shape                     # block (1, D, S)
    dh = d // nhead
    scale = 1.0 / (dh ** 0.5)

    xt = x_ref[0].astype(jnp.float32)         # (D, S) residual stream, f32
    mask = mask_ref[...] if use_mask else None  # (S, S) additive float mask

    for layer in range(nlayer):               # static unroll over layers
        # ---- fused QKV projection: one (3D, D) x (D, S) MXU matmul ---------
        qkv_t = jnp.dot(w_in_ref[layer], xt.astype(jnp.bfloat16),
                        preferred_element_type=jnp.float32) + b_in_ref[layer]
        # Heads land on sublanes via a free leading-dim reshape (no lane work).
        qkv = qkv_t.reshape(3, nhead, dh, s)  # (3, H, dh, S)
        q_h = qkv[0].astype(jnp.bfloat16)
        k_h = qkv[1].astype(jnp.bfloat16)
        v_h = qkv[2].astype(jnp.bfloat16)

        # ---- all-head scores in one batched matmul (contract head_dim) ----
        sc = jnp.einsum("hci,hcj->hij", q_h, k_h,
                        preferred_element_type=jnp.float32) * scale   # (H,S,S)
        if use_mask:
            # TODO(synk): only additive float (S, S) src_mask is supported;
            # boolean masks and key_padding_mask are not handled.
            sc = sc + mask[None, :, :]

        # softmax over keys, f32 (EUP exp + approx reciprocal for the denom)
        sc = sc - jnp.max(sc, axis=-1, keepdims=True)
        p = jnp.exp(sc)
        p = p * pl.reciprocal(jnp.sum(p, axis=-1, keepdims=True), approx=True)

        # ---- all-head context in one batched matmul, already (H, dh, S) ----
        ctx = jnp.einsum("hcj,hij->hci", v_h, p.astype(jnp.bfloat16),
                         preferred_element_type=jnp.float32)          # (H,dh,S)
        ctx2 = ctx.reshape(d, s)              # free leading merge == head concat

        # ---- single fused output projection (depth D, not 4 x depth dh) ----
        attn_t = jnp.dot(w_out_ref[layer], ctx2.astype(jnp.bfloat16),
                         preferred_element_type=jnp.float32) + b_out_ref[layer]

        # ---- residual + LayerNorm (post-norm); dropout omitted (eval) ------
        # TODO(synk): dropout omitted (eval mode only).
        xt = _add_layernorm_t(xt, attn_t, g1_ref[layer], be1_ref[layer])

        # ---- feed-forward: linear1 -> ReLU -> linear2 -----------------------
        hid = jnp.dot(w1_ref[layer], xt.astype(jnp.bfloat16),
                      preferred_element_type=jnp.float32) + b1_ref[layer]
        hid = jnp.maximum(hid, 0.0)
        ff = jnp.dot(w2_ref[layer], hid.astype(jnp.bfloat16),
                     preferred_element_type=jnp.float32) + b2_ref[layer]
        xt = _add_layernorm_t(xt, ff, g2_ref[layer], be2_ref[layer])

    o_ref[0] = xt                              # (D, S) f32


# ------------------------------- wrapper -------------------------------------
def transformer_encoder(src, params, mask=None):
    """forward(src, mask=None): apply each cloned layer in sequence (fused)."""
    B, S, D = src.shape
    use_mask = mask is not None

    # Wrapper-side layout plumbing: the kernel works in (D, S) per batch.
    xt = jnp.swapaxes(src, 1, 2).astype(jnp.float32)       # (B, D, S)

    args, in_specs = [], []
    if use_mask:
        args.append(mask.astype(jnp.float32))
        in_specs.append(pl.BlockSpec((S, S), lambda b: (0, 0)))
    args.append(xt)
    in_specs.append(pl.BlockSpec((1, D, S), lambda b: (b, 0, 0)))
    for name in PARAM_ORDER:
        p = params[name]
        args.append(p)
        # weights are grid-invariant: same block for every grid step
        in_specs.append(pl.BlockSpec(p.shape, lambda b, nd=p.ndim: (0,) * nd))

    kern = functools.partial(_encoder_stack_kernel, nlayer=N_LAYER,
                             nhead=N_HEAD, use_mask=use_mask)
    out_t = pl.pallas_call(
        kern,
        out_shape=jax.ShapeDtypeStruct((B, D, S), jnp.float32),
        grid=(B,),
        in_specs=in_specs,
        out_specs=pl.BlockSpec((1, D, S), lambda b: (b, 0, 0)),
        compiler_params=pltpu.CompilerParams(
            dimension_semantics=("parallel",),        # 2 TCs on v7x
            vmem_limit_bytes=32 * 1024 * 1024),
    )(*args)
    return jnp.swapaxes(out_t, 1, 2)                        # (B, S, D)


# ------------------------- deterministic parameters --------------------------
def init_params(key):
    ks = jax.random.split(key, 4)

    def w(k, shape):                      # PyTorch (out, in) layout, bf16 weights
        fan_in = shape[-1]
        return (jax.random.normal(k, shape, jnp.float32)
                / jnp.sqrt(fan_in)).astype(jnp.bfloat16)

    one_layer = {
        "w_in": w(ks[0], (3 * D_MODEL, D_MODEL)),      # in_proj_weight
        "b_in": jnp.zeros((3 * D_MODEL, 1), jnp.float32),
        "w_out": w(ks[1], (D_MODEL, D_MODEL)),         # out_proj.weight
        "b_out": jnp.zeros((D_MODEL, 1), jnp.float32),
        "g1": jnp.ones((D_MODEL, 1), jnp.float32),
        "be1": jnp.zeros((D_MODEL, 1), jnp.float32),
        "w1": w(ks[2], (D_FF, D_MODEL)),               # linear1.weight
        "b1": jnp.zeros((D_FF, 1), jnp.float32),
        "w2": w(ks[3], (D_MODEL, D_FF)),               # linear2.weight
        "b2": jnp.zeros((D_MODEL, 1), jnp.float32),
        "g2": jnp.ones((D_MODEL, 1), jnp.float32),
        "be2": jnp.zeros((D_MODEL, 1), jnp.float32),
    }
    # clones(): identical per-layer deep copies, stacked on a leading N_LAYER
    # axis (duplicate bytes accepted knowingly; supports distinct weights too).
    return {name: jnp.stack([p] * N_LAYER, axis=0)
            for name, p in one_layer.items()}


if __name__ == "__main__":
    key = jax.random.PRNGKey(0)
    k_x, k_p = jax.random.split(key)

    B, S = 2, 8
    x = jax.random.normal(k_x, (B, S, D_MODEL), jnp.float32)
    params = init_params(k_p)

    # mask=None path
    fwd = jax.jit(lambda xx, pp: transformer_encoder(xx, pp, mask=None))
    out = fwd(x, params)
    jax.block_until_ready(out)
    assert out.shape == (B, S, D_MODEL)
    assert bool(jnp.all(jnp.isfinite(out)))

    # additive (S, S) mask path (causal)
    mask = jnp.where(jnp.tril(jnp.ones((S, S), bool)), 0.0, -1e9)
    out_m = jax.jit(transformer_encoder)(x, params, mask.astype(jnp.float32))
    jax.block_until_ready(out_m)
    assert out_m.shape == (B, S, D_MODEL)
    assert bool(jnp.all(jnp.isfinite(out_m)))

    print("KERNEL_OK")
</pallas_src>

<mosaic_0001>
module attributes {stable_mosaic.version = 11 : i64} {
  func.func @_encoder_stack_kernel(%arg0: i32, %arg1: memref<1x32x8xf32, #tpu.memory_space<vmem>>, %arg2: memref<2x96x32xbf16, #tpu.memory_space<vmem>>, %arg3: memref<2x96x1xf32, #tpu.memory_space<vmem>>, %arg4: memref<2x32x32xbf16, #tpu.memory_space<vmem>>, %arg5: memref<2x32x1xf32, #tpu.memory_space<vmem>>, %arg6: memref<2x32x1xf32, #tpu.memory_space<vmem>>, %arg7: memref<2x32x1xf32, #tpu.memory_space<vmem>>, %arg8: memref<2x64x32xbf16, #tpu.memory_space<vmem>>, %arg9: memref<2x64x1xf32, #tpu.memory_space<vmem>>, %arg10: memref<2x32x64xbf16, #tpu.memory_space<vmem>>, %arg11: memref<2x32x1xf32, #tpu.memory_space<vmem>>, %arg12: memref<2x32x1xf32, #tpu.memory_space<vmem>>, %arg13: memref<2x32x1xf32, #tpu.memory_space<vmem>>, %arg14: memref<1x32x8xf32, #tpu.memory_space<vmem>>) attributes {dimension_semantics = [#tpu.dimension_semantics<parallel>], iteration_bounds = array<i64: 2>, scalar_prefetch = 0 : i64, scratch_operands = 0 : i64, tpu.core_type = #tpu.core_type<tc>, window_params = [{transform_indices = @transform_0, window_bounds = array<i64: 1, 32, 8>}, {pipeline_mode = #tpu.pipeline_mode<synchronous>, transform_indices = @transform_1, window_bounds = array<i64: 2, 96, 32>}, {pipeline_mode = #tpu.pipeline_mode<synchronous>, transform_indices = @transform_2, window_bounds = array<i64: 2, 96, 1>}, {pipeline_mode = #tpu.pipeline_mode<synchronous>, transform_indices = @transform_3, window_bounds = array<i64: 2, 32, 32>}, {pipeline_mode = #tpu.pipeline_mode<synchronous>, transform_indices = @transform_4, window_bounds = array<i64: 2, 32, 1>}, {pipeline_mode = #tpu.pipeline_mode<synchronous>, transform_indices = @transform_5, window_bounds = array<i64: 2, 32, 1>}, {pipeline_mode = #tpu.pipeline_mode<synchronous>, transform_indices = @transform_6, window_bounds = array<i64: 2, 32, 1>}, {pipeline_mode = #tpu.pipeline_mode<synchronous>, transform_indices = @transform_7, window_bounds = array<i64: 2, 64, 32>}, {pipeline_mode = #tpu.pipeline_mode<synchronous>, transform_indices = @transform_8, window_bounds = array<i64: 2, 64, 1>}, {pipeline_mode = #tpu.pipeline_mode<synchronous>, transform_indices = @transform_9, window_bounds = array<i64: 2, 32, 64>}, {pipeline_mode = #tpu.pipeline_mode<synchronous>, transform_indices = @transform_10, window_bounds = array<i64: 2, 32, 1>}, {pipeline_mode = #tpu.pipeline_mode<synchronous>, transform_indices = @transform_11, window_bounds = array<i64: 2, 32, 1>}, {pipeline_mode = #tpu.pipeline_mode<synchronous>, transform_indices = @transform_12, window_bounds = array<i64: 2, 32, 1>}, {transform_indices = @transform_13, window_bounds = array<i64: 1, 32, 8>}]} {
    %c0 = arith.constant 0 : index
    %c0_0 = arith.constant 0 : index
    %c0_1 = arith.constant 0 : index
    %0 = vector.load %arg1[%c0, %c0_0, %c0_1] : memref<1x32x8xf32, #tpu.memory_space<vmem>>, vector<1x32x8xf32>
    %1 = vector.shape_cast %0 : vector<1x32x8xf32> to vector<32x8xf32>
    %c0_2 = arith.constant 0 : index
    %c0_3 = arith.constant 0 : index
    %c0_4 = arith.constant 0 : index
    %2 = vector.load %arg2[%c0_2, %c0_3, %c0_4] : memref<2x96x32xbf16, #tpu.memory_space<vmem>>, vector<1x96x32xbf16>
    %3 = vector.shape_cast %2 : vector<1x96x32xbf16> to vector<96x32xbf16>
    %4 = arith.truncf %1 : vector<32x8xf32> to vector<32x8xbf16>
    %cst = arith.constant dense<0.000000e+00> : vector<96x8xf32>
    %5 = tpu.matmul %3, %4, %cst {dimension_numbers = #tpu.dot_dimension_numbers<[1], [0], [0], [1], [0, 0, 1, 1], [], []>} : vector<96x32xbf16>, vector<32x8xbf16>, vector<96x8xf32> -> vector<96x8xf32>
    %c0_5 = arith.constant 0 : index
    %c0_6 = arith.constant 0 : index
    %c0_7 = arith.constant 0 : index
    %6 = vector.load %arg3[%c0_5, %c0_6, %c0_7] : memref<2x96x1xf32, #tpu.memory_space<vmem>>, vector<1x96x1xf32>
    %7 = vector.shape_cast %6 : vector<1x96x1xf32> to vector<96x1xf32>
    %8 = vector.broadcast %7 : vector<96x1xf32> to vector<96x8xf32>
    %9 = arith.addf %5, %8 : vector<96x8xf32>
    %10 = vector.shape_cast %9 : vector<96x8xf32> to vector<3x4x8x8xf32>
    %11 = vector.extract_strided_slice %10 {offsets = [0, 0, 0, 0], sizes = [1, 4, 8, 8], strides = [1, 1, 1, 1]} : vector<3x4x8x8xf32> to vector<1x4x8x8xf32>
    %12 = vector.shape_cast %11 : vector<1x4x8x8xf32> to vector<4x8x8xf32>
    %13 = arith.truncf %12 : vector<4x8x8xf32> to vector<4x8x8xbf16>
    %14 = vector.extract_strided_slice %10 {offsets = [1, 0, 0, 0], sizes = [1, 4, 8, 8], strides = [1, 1, 1, 1]} : vector<3x4x8x8xf32> to vector<1x4x8x8xf32>
    %15 = vector.shape_cast %14 : vector<1x4x8x8xf32> to vector<4x8x8xf32>
    %16 = arith.truncf %15 : vector<4x8x8xf32> to vector<4x8x8xbf16>
    %17 = vector.extract_strided_slice %10 {offsets = [2, 0, 0, 0], sizes = [1, 4, 8, 8], strides = [1, 1, 1, 1]} : vector<3x4x8x8xf32> to vector<1x4x8x8xf32>
    %18 = vector.shape_cast %17 : vector<1x4x8x8xf32> to vector<4x8x8xf32>
    %19 = arith.truncf %18 : vector<4x8x8xf32> to vector<4x8x8xbf16>
    "tpu.trace_start"() <{level = 10 : i32, message = "hci,hcj->hij"}> : () -> ()
    %cst_8 = arith.constant dense<0.000000e+00> : vector<4x8x8xf32>
    %20 = tpu.matmul %13, %16, %cst_8 {dimension_numbers = #tpu.dot_dimension_numbers<[1], [1], [2], [2], [0, 0, 0, 2, 1, 2], [0], [0]>} : vector<4x8x8xbf16>, vector<4x8x8xbf16>, vector<4x8x8xf32> -> vector<4x8x8xf32>
    "tpu.trace_stop"() : () -> ()
    %cst_9 = arith.constant 0.353553385 : f32
    %21 = vector.broadcast %cst_9 : f32 to vector<4x8x8xf32>
    %22 = arith.mulf %20, %21 : vector<4x8x8xf32>
    %cst_10 = arith.constant dense<0xFF800000> : vector<4x8xf32>
    %23 = vector.multi_reduction <maximumf>, %22, %cst_10 [2] : vector<4x8x8xf32> to vector<4x8xf32>
    %24 = vector.shape_cast %23 : vector<4x8xf32> to vector<4x8x1xf32>
    %25 = vector.broadcast %24 : vector<4x8x1xf32> to vector<4x8x8xf32>
    %26 = arith.subf %22, %25 : vector<4x8x8xf32>
    %27 = math.exp %26 : vector<4x8x8xf32>
    %cst_11 = arith.constant dense<0.000000e+00> : vector<4x8xf32>
    %28 = vector.multi_reduction <add>, %27, %cst_11 [2] : vector<4x8x8xf32> to vector<4x8xf32>
    %29 = vector.shape_cast %28 : vector<4x8xf32> to vector<4x8x1xf32>
    %30 = tpu.reciprocal %29 {approx = true} : vector<4x8x1xf32> -> vector<4x8x1xf32>
    %31 = vector.broadcast %30 : vector<4x8x1xf32> to vector<4x8x8xf32>
    %32 = arith.mulf %27, %31 : vector<4x8x8xf32>
    %33 = arith.truncf %32 : vector<4x8x8xf32> to vector<4x8x8xbf16>
    "tpu.trace_start"() <{level = 10 : i32, message = "hcj,hij->hci"}> : () -> ()
    %cst_12 = arith.constant dense<0.000000e+00> : vector<4x8x8xf32>
    %34 = tpu.matmul %19, %33, %cst_12 {dimension_numbers = #tpu.dot_dimension_numbers<[2], [2], [1], [1], [0, 0, 0, 1, 1, 1], [0], [0]>} : vector<4x8x8xbf16>, vector<4x8x8xbf16>, vector<4x8x8xf32> -> vector<4x8x8xf32>
    "tpu.trace_stop"() : () -> ()
    %35 = vector.shape_cast %34 : vector<4x8x8xf32> to vector<32x8xf32>
    %c0_13 = arith.constant 0 : index
    %c0_14 = arith.constant 0 : index
    %c0_15 = arith.constant 0 : index
    %36 = vector.load %arg4[%c0_13, %c0_14, %c0_15] : memref<2x32x32xbf16, #tpu.memory_space<vmem>>, vector<1x32x32xbf16>
    %37 = vector.shape_cast %36 : vector<1x32x32xbf16> to vector<32x32xbf16>
    %38 = arith.truncf %35 : vector<32x8xf32> to vector<32x8xbf16>
    %cst_16 = arith.constant dense<0.000000e+00> : vector<32x8xf32>
    %39 = tpu.matmul %37, %38, %cst_16 {dimension_numbers = #tpu.dot_dimension_numbers<[1], [0], [0], [1], [0, 0, 1, 1], [], []>} : vector<32x32xbf16>, vector<32x8xbf16>, vector<32x8xf32> -> vector<32x8xf32>
    %c0_17 = arith.constant 0 : index
    %c0_18 = arith.constant 0 : index
    %c0_19 = arith.constant 0 : index
    %40 = vector.load %arg5[%c0_17, %c0_18, %c0_19] : memref<2x32x1xf32, #tpu.memory_space<vmem>>, vector<1x32x1xf32>
    %41 = vector.shape_cast %40 : vector<1x32x1xf32> to vector<32x1xf32>
    %42 = vector.broadcast %41 : vector<32x1xf32> to vector<32x8xf32>
    %43 = arith.addf %39, %42 : vector<32x8xf32>
    %c0_20 = arith.constant 0 : index
    %c0_21 = arith.constant 0 : index
    %c0_22 = arith.constant 0 : index
    %44 = vector.load %arg6[%c0_20, %c0_21, %c0_22] : memref<2x32x1xf32, #tpu.memory_space<vmem>>, vector<1x32x1xf32>
    %45 = vector.shape_cast %44 : vector<1x32x1xf32> to vector<32x1xf32>
    %c0_23 = arith.constant 0 : index
    %c0_24 = arith.constant 0 : index
    %c0_25 = arith.constant 0 : index
    %46 = vector.load %arg7[%c0_23, %c0_24, %c0_25] : memref<2x32x1xf32, #tpu.memory_space<vmem>>, vector<1x32x1xf32>
    %47 = vector.shape_cast %46 : vector<1x32x1xf32> to vector<32x1xf32>
    %48 = arith.addf %1, %43 : vector<32x8xf32>
    %cst_26 = arith.constant dense<0.000000e+00> : vector<8xf32>
    %49 = vector.multi_reduction <add>, %48, %cst_26 [0] : vector<32x8xf32> to vector<8xf32>
    %50 = vector.shape_cast %49 : vector<8xf32> to vector<1x8xf32>
    %cst_27 = arith.constant 3.200000e+01 : f32
    %51 = vector.broadcast %cst_27 : f32 to vector<1x8xf32>
    %52 = arith.divf %50, %51 : vector<1x8xf32>
    %53 = vector.broadcast %52 : vector<1x8xf32> to vector<32x8xf32>
    %54 = arith.subf %48, %53 : vector<32x8xf32>
    %55 = arith.mulf %54, %54 : vector<32x8xf32>
    %cst_28 = arith.constant dense<0.000000e+00> : vector<8xf32>
    %56 = vector.multi_reduction <add>, %55, %cst_28 [0] : vector<32x8xf32> to vector<8xf32>
    %57 = vector.shape_cast %56 : vector<8xf32> to vector<1x8xf32>
    %cst_29 = arith.constant 3.200000e+01 : f32
    %58 = vector.broadcast %cst_29 : f32 to vector<1x8xf32>
    %59 = arith.divf %57, %58 : vector<1x8xf32>
    %60 = vector.broadcast %52 : vector<1x8xf32> to vector<32x8xf32>
    %61 = arith.subf %48, %60 : vector<32x8xf32>
    %cst_30 = arith.constant 9.99999974E-6 : f32
    %62 = vector.broadcast %cst_30 : f32 to vector<1x8xf32>
    %63 = arith.addf %59, %62 : vector<1x8xf32>
    %64 = math.rsqrt %63 : vector<1x8xf32>
    %65 = vector.broadcast %64 : vector<1x8xf32> to vector<32x8xf32>
    %66 = arith.mulf %61, %65 : vector<32x8xf32>
    %67 = vector.broadcast %45 : vector<32x1xf32> to vector<32x8xf32>
    %68 = arith.mulf %66, %67 : vector<32x8xf32>
    %69 = vector.broadcast %47 : vector<32x1xf32> to vector<32x8xf32>
    %70 = arith.addf %68, %69 : vector<32x8xf32>
    %c0_31 = arith.constant 0 : index
    %c0_32 = arith.constant 0 : index
    %c0_33 = arith.constant 0 : index
    %71 = vector.load %arg8[%c0_31, %c0_32, %c0_33] : memref<2x64x32xbf16, #tpu.memory_space<vmem>>, vector<1x64x32xbf16>
    %72 = vector.shape_cast %71 : vector<1x64x32xbf16> to vector<64x32xbf16>
    %73 = arith.truncf %70 : vector<32x8xf32> to vector<32x8xbf16>
    %cst_34 = arith.constant dense<0.000000e+00> : vector<64x8xf32>
    %74 = tpu.matmul %72, %73, %cst_34 {dimension_numbers = #tpu.dot_dimension_numbers<[1], [0], [0], [1], [0, 0, 1, 1], [], []>} : vector<64x32xbf16>, vector<32x8xbf16>, vector<64x8xf32> -> vector<64x8xf32>
    %c0_35 = arith.constant 0 : index
    %c0_36 = arith.constant 0 : index
    %c0_37 = arith.constant 0 : index
    %75 = vector.load %arg9[%c0_35, %c0_36, %c0_37] : memref<2x64x1xf32, #tpu.memory_space<vmem>>, vector<1x64x1xf32>
    %76 = vector.shape_cast %75 : vector<1x64x1xf32> to vector<64x1xf32>
    %77 = vector.broadcast %76 : vector<64x1xf32> to vector<64x8xf32>
    %78 = arith.addf %74, %77 : vector<64x8xf32>
    %cst_38 = arith.constant 0.000000e+00 : f32
    %79 = vector.broadcast %cst_38 : f32 to vector<64x8xf32>
    %80 = arith.maximumf %78, %79 : vector<64x8xf32>
    %c0_39 = arith.constant 0 : index
    %c0_40 = arith.constant 0 : index
    %c0_41 = arith.constant 0 : index
    %81 = vector.load %arg10[%c0_39, %c0_40, %c0_41] : memref<2x32x64xbf16, #tpu.memory_space<vmem>>, vector<1x32x64xbf16>
    %82 = vector.shape_cast %81 : vector<1x32x64xbf16> to vector<32x64xbf16>
    %83 = arith.truncf %80 : vector<64x8xf32> to vector<64x8xbf16>
    %cst_42 = arith.constant dense<0.000000e+00> : vector<32x8xf32>
    %84 = tpu.matmul %82, %83, %cst_42 {dimension_numbers = #tpu.dot_dimension_numbers<[1], [0], [0], [1], [0, 0, 1, 1], [], []>} : vector<32x64xbf16>, vector<64x8xbf16>, vector<32x8xf32> -> vector<32x8xf32>
    %c0_43 = arith.constant 0 : index
    %c0_44 = arith.constant 0 : index
    %c0_45 = arith.constant 0 : index
    %85 = vector.load %arg11[%c0_43, %c0_44, %c0_45] : memref<2x32x1xf32, #tpu.memory_space<vmem>>, vector<1x32x1xf32>
    %86 = vector.shape_cast %85 : vector<1x32x1xf32> to vector<32x1xf32>
    %87 = vector.broadcast %86 : vector<32x1xf32> to vector<32x8xf32>
    %88 = arith.addf %84, %87 : vector<32x8xf32>
    %c0_46 = arith.constant 0 : index
    %c0_47 = arith.constant 0 : index
    %c0_48 = arith.constant 0 : index
    %89 = vector.load %arg12[%c0_46, %c0_47, %c0_48] : memref<2x32x1xf32, #tpu.memory_space<vmem>>, vector<1x32x1xf32>
    %90 = vector.shape_cast %89 : vector<1x32x1xf32> to vector<32x1xf32>
    %c0_49 = arith.constant 0 : index
    %c0_50 = arith.constant 0 : index
    %c0_51 = arith.constant 0 : index
    %91 = vector.load %arg13[%c0_49, %c0_50, %c0_51] : memref<2x32x1xf32, #tpu.memory_space<vmem>>, vector<1x32x1xf32>
    %92 = vector.shape_cast %91 : vector<1x32x1xf32> to vector<32x1xf32>
    %93 = arith.addf %70, %88 : vector<32x8xf32>
    %cst_52 = arith.constant dense<0.000000e+00> : vector<8xf32>
    %94 = vector.multi_reduction <add>, %93, %cst_52 [0] : vector<32x8xf32> to vector<8xf32>
    %95 = vector.shape_cast %94 : vector<8xf32> to vector<1x8xf32>
    %cst_53 = arith.constant 3.200000e+01 : f32
    %96 = vector.broadcast %cst_53 : f32 to vector<1x8xf32>
    %97 = arith.divf %95, %96 : vector<1x8xf32>
    %98 = vector.broadcast %97 : vector<1x8xf32> to vector<32x8xf32>
    %99 = arith.subf %93, %98 : vector<32x8xf32>
    %100 = arith.mulf %99, %99 : vector<32x8xf32>
    %cst_54 = arith.constant dense<0.000000e+00> : vector<8xf32>
    %101 = vector.multi_reduction <add>, %100, %cst_54 [0] : vector<32x8xf32> to vector<8xf32>
    %102 = vector.shape_cast %101 : vector<8xf32> to vector<1x8xf32>
    %cst_55 = arith.constant 3.200000e+01 : f32
    %103 = vector.broadcast %cst_55 : f32 to vector<1x8xf32>
    %104 = arith.divf %102, %103 : vector<1x8xf32>
    %105 = vector.broadcast %97 : vector<1x8xf32> to vector<32x8xf32>
    %106 = arith.subf %93, %105 : vector<32x8xf32>
    %cst_56 = arith.constant 9.99999974E-6 : f32
    %107 = vector.broadcast %cst_56 : f32 to vector<1x8xf32>
    %108 = arith.addf %104, %107 : vector<1x8xf32>
    %109 = math.rsqrt %108 : vector<1x8xf32>
    %110 = vector.broadcast %109 : vector<1x8xf32> to vector<32x8xf32>
    %111 = arith.mulf %106, %110 : vector<32x8xf32>
    %112 = vector.broadcast %90 : vector<32x1xf32> to vector<32x8xf32>
    %113 = arith.mulf %111, %112 : vector<32x8xf32>
    %114 = vector.broadcast %92 : vector<32x1xf32> to vector<32x8xf32>
    %115 = arith.addf %113, %114 : vector<32x8xf32>
    %c1 = arith.constant 1 : index
    %c0_57 = arith.constant 0 : index
    %c0_58 = arith.constant 0 : index
    %116 = vector.load %arg2[%c1, %c0_57, %c0_58] : memref<2x96x32xbf16, #tpu.memory_space<vmem>>, vector<1x96x32xbf16>
    %117 = vector.shape_cast %116 : vector<1x96x32xbf16> to vector<96x32xbf16>
    %118 = arith.truncf %115 : vector<32x8xf32> to vector<32x8xbf16>
    %cst_59 = arith.constant dense<0.000000e+00> : vector<96x8xf32>
    %119 = tpu.matmul %117, %118, %cst_59 {dimension_numbers = #tpu.dot_dimension_numbers<[1], [0], [0], [1], [0, 0, 1, 1], [], []>} : vector<96x32xbf16>, vector<32x8xbf16>, vector<96x8xf32> -> vector<96x8xf32>
    %c1_60 = arith.constant 1 : index
    %c0_61 = arith.constant 0 : index
    %c0_62 = arith.constant 0 : index
    %120 = vector.load %arg3[%c1_60, %c0_61, %c0_62] : memref<2x96x1xf32, #tpu.memory_space<vmem>>, vector<1x96x1xf32>
    %121 = vector.shape_cast %120 : vector<1x96x1xf32> to vector<96x1xf32>
    %122 = vector.broadcast %121 : vector<96x1xf32> to vector<96x8xf32>
    %123 = arith.addf %119, %122 : vector<96x8xf32>
    %124 = vector.shape_cast %123 : vector<96x8xf32> to vector<3x4x8x8xf32>
    %125 = vector.extract_strided_slice %124 {offsets = [0, 0, 0, 0], sizes = [1, 4, 8, 8], strides = [1, 1, 1, 1]} : vector<3x4x8x8xf32> to vector<1x4x8x8xf32>
    %126 = vector.shape_cast %125 : vector<1x4x8x8xf32> to vector<4x8x8xf32>
    %127 = arith.truncf %126 : vector<4x8x8xf32> to vector<4x8x8xbf16>
    %128 = vector.extract_strided_slice %124 {offsets = [1, 0, 0, 0], sizes = [1, 4, 8, 8], strides = [1, 1, 1, 1]} : vector<3x4x8x8xf32> to vector<1x4x8x8xf32>
    %129 = vector.shape_cast %128 : vector<1x4x8x8xf32> to vector<4x8x8xf32>
    %130 = arith.truncf %129 : vector<4x8x8xf32> to vector<4x8x8xbf16>
    %131 = vector.extract_strided_slice %124 {offsets = [2, 0, 0, 0], sizes = [1, 4, 8, 8], strides = [1, 1, 1, 1]} : vector<3x4x8x8xf32> to vector<1x4x8x8xf32>
    %132 = vector.shape_cast %131 : vector<1x4x8x8xf32> to vector<4x8x8xf32>
    %133 = arith.truncf %132 : vector<4x8x8xf32> to vector<4x8x8xbf16>
    "tpu.trace_start"() <{level = 10 : i32, message = "hci,hcj->hij"}> : () -> ()
    %cst_63 = arith.constant dense<0.000000e+00> : vector<4x8x8xf32>
    %134 = tpu.matmul %127, %130, %cst_63 {dimension_numbers = #tpu.dot_dimension_numbers<[1], [1], [2], [2], [0, 0, 0, 2, 1, 2], [0], [0]>} : vector<4x8x8xbf16>, vector<4x8x8xbf16>, vector<4x8x8xf32> -> vector<4x8x8xf32>
    "tpu.trace_stop"() : () -> ()
    %cst_64 = arith.constant 0.353553385 : f32
    %135 = vector.broadcast %cst_64 : f32 to vector<4x8x8xf32>
    %136 = arith.mulf %134, %135 : vector<4x8x8xf32>
    %cst_65 = arith.constant dense<0xFF800000> : vector<4x8xf32>
    %137 = vector.multi_reduction <maximumf>, %136, %cst_65 [2] : vector<4x8x8xf32> to vector<4x8xf32>
    %138 = vector.shape_cast %137 : vector<4x8xf32> to vector<4x8x1xf32>
    %139 = vector.broadcast %138 : vector<4x8x1xf32> to vector<4x8x8xf32>
    %140 = arith.subf %136, %139 : vector<4x8x8xf32>
    %141 = math.exp %140 : vector<4x8x8xf32>
    %cst_66 = arith.constant dense<0.000000e+00> : vector<4x8xf32>
    %142 = vector.multi_reduction <add>, %141, %cst_66 [2] : vector<4x8x8xf32> to vector<4x8xf32>
    %143 = vector.shape_cast %142 : vector<4x8xf32> to vector<4x8x1xf32>
    %144 = tpu.reciprocal %143 {approx = true} : vector<4x8x1xf32> -> vector<4x8x1xf32>
    %145 = vector.broadcast %144 : vector<4x8x1xf32> to vector<4x8x8xf32>
    %146 = arith.mulf %141, %145 : vector<4x8x8xf32>
    %147 = arith.truncf %146 : vector<4x8x8xf32> to vector<4x8x8xbf16>
    "tpu.trace_start"() <{level = 10 : i32, message = "hcj,hij->hci"}> : () -> ()
    %cst_67 = arith.constant dense<0.000000e+00> : vector<4x8x8xf32>
    %148 = tpu.matmul %133, %147, %cst_67 {dimension_numbers = #tpu.dot_dimension_numbers<[2], [2], [1], [1], [0, 0, 0, 1, 1, 1], [0], [0]>} : vector<4x8x8xbf16>, vector<4x8x8xbf16>, vector<4x8x8xf32> -> vector<4x8x8xf32>
    "tpu.trace_stop"() : () -> ()
    %149 = vector.shape_cast %148 : vector<4x8x8xf32> to vector<32x8xf32>
    %c1_68 = arith.constant 1 : index
    %c0_69 = arith.constant 0 : index
    %c0_70 = arith.constant 0 : index
    %150 = vector.load %arg4[%c1_68, %c0_69, %c0_70] : memref<2x32x32xbf16, #tpu.memory_space<vmem>>, vector<1x32x32xbf16>
    %151 = vector.shape_cast %150 : vector<1x32x32xbf16> to vector<32x32xbf16>
    %152 = arith.truncf %149 : vector<32x8xf32> to vector<32x8xbf16>
    %cst_71 = arith.constant dense<0.000000e+00> : vector<32x8xf32>
    %153 = tpu.matmul %151, %152, %cst_71 {dimension_numbers = #tpu.dot_dimension_numbers<[1], [0], [0], [1], [0, 0, 1, 1], [], []>} : vector<32x32xbf16>, vector<32x8xbf16>, vector<32x8xf32> -> vector<32x8xf32>
    %c1_72 = arith.constant 1 : index
    %c0_73 = arith.constant 0 : index
    %c0_74 = arith.constant 0 : index
    %154 = vector.load %arg5[%c1_72, %c0_73, %c0_74] : memref<2x32x1xf32, #tpu.memory_space<vmem>>, vector<1x32x1xf32>
    %155 = vector.shape_cast %154 : vector<1x32x1xf32> to vector<32x1xf32>
    %156 = vector.broadcast %155 : vector<32x1xf32> to vector<32x8xf32>
    %157 = arith.addf %153, %156 : vector<32x8xf32>
    %c1_75 = arith.constant 1 : index
    %c0_76 = arith.constant 0 : index
    %c0_77 = arith.constant 0 : index
    %158 = vector.load %arg6[%c1_75, %c0_76, %c0_77] : memref<2x32x1xf32, #tpu.memory_space<vmem>>, vector<1x32x1xf32>
    %159 = vector.shape_cast %158 : vector<1x32x1xf32> to vector<32x1xf32>
    %c1_78 = arith.constant 1 : index
    %c0_79 = arith.constant 0 : index
    %c0_80 = arith.constant 0 : index
    %160 = vector.load %arg7[%c1_78, %c0_79, %c0_80] : memref<2x32x1xf32, #tpu.memory_space<vmem>>, vector<1x32x1xf32>
    %161 = vector.shape_cast %160 : vector<1x32x1xf32> to vector<32x1xf32>
    %162 = arith.addf %115, %157 : vector<32x8xf32>
    %cst_81 = arith.constant dense<0.000000e+00> : vector<8xf32>
    %163 = vector.multi_reduction <add>, %162, %cst_81 [0] : vector<32x8xf32> to vector<8xf32>
    %164 = vector.shape_cast %163 : vector<8xf32> to vector<1x8xf32>
    %cst_82 = arith.constant 3.200000e+01 : f32
    %165 = vector.broadcast %cst_82 : f32 to vector<1x8xf32>
    %166 = arith.divf %164, %165 : vector<1x8xf32>
    %167 = vector.broadcast %166 : vector<1x8xf32> to vector<32x8xf32>
    %168 = arith.subf %162, %167 : vector<32x8xf32>
    %169 = arith.mulf %168, %168 : vector<32x8xf32>
    %cst_83 = arith.constant dense<0.000000e+00> : vector<8xf32>
    %170 = vector.multi_reduction <add>, %169, %cst_83 [0] : vector<32x8xf32> to vector<8xf32>
    %171 = vector.shape_cast %170 : vector<8xf32> to vector<1x8xf32>
    %cst_84 = arith.constant 3.200000e+01 : f32
    %172 = vector.broadcast %cst_84 : f32 to vector<1x8xf32>
    %173 = arith.divf %171, %172 : vector<1x8xf32>
    %174 = vector.broadcast %166 : vector<1x8xf32> to vector<32x8xf32>
    %175 = arith.subf %162, %174 : vector<32x8xf32>
    %cst_85 = arith.constant 9.99999974E-6 : f32
    %176 = vector.broadcast %cst_85 : f32 to vector<1x8xf32>
    %177 = arith.addf %173, %176 : vector<1x8xf32>
    %178 = math.rsqrt %177 : vector<1x8xf32>
    %179 = vector.broadcast %178 : vector<1x8xf32> to vector<32x8xf32>
    %180 = arith.mulf %175, %179 : vector<32x8xf32>
    %181 = vector.broadcast %159 : vector<32x1xf32> to vector<32x8xf32>
    %182 = arith.mulf %180, %181 : vector<32x8xf32>
    %183 = vector.broadcast %161 : vector<32x1xf32> to vector<32x8xf32>
    %184 = arith.addf %182, %183 : vector<32x8xf32>
    %c1_86 = arith.constant 1 : index
    %c0_87 = arith.constant 0 : index
    %c0_88 = arith.constant 0 : index
    %185 = vector.load %arg8[%c1_86, %c0_87, %c0_88] : memref<2x64x32xbf16, #tpu.memory_space<vmem>>, vector<1x64x32xbf16>
    %186 = vector.shape_cast %185 : vector<1x64x32xbf16> to vector<64x32xbf16>
    %187 = arith.truncf %184 : vector<32x8xf32> to vector<32x8xbf16>
    %cst_89 = arith.constant dense<0.000000e+00> : vector<64x8xf32>
    %188 = tpu.matmul %186, %187, %cst_89 {dimension_numbers = #tpu.dot_dimension_numbers<[1], [0], [0], [1], [0, 0, 1, 1], [], []>} : vector<64x32xbf16>, vector<32x8xbf16>, vector<64x8xf32> -> vector<64x8xf32>
    %c1_90 = arith.constant 1 : index
    %c0_91 = arith.constant 0 : index
    %c0_92 = arith.constant 0 : index
    %189 = vector.load %arg9[%c1_90, %c0_91, %c0_92] : memref<2x64x1xf32, #tpu.memory_space<vmem>>, vector<1x64x1xf32>
    %190 = vector.shape_cast %189 : vector<1x64x1xf32> to vector<64x1xf32>
    %191 = vector.broadcast %190 : vector<64x1xf32> to vector<64x8xf32>
    %192 = arith.addf %188, %191 : vector<64x8xf32>
    %cst_93 = arith.constant 0.000000e+00 : f32
    %193 = vector.broadcast %cst_93 : f32 to vector<64x8xf32>
    %194 = arith.maximumf %192, %193 : vector<64x8xf32>
    %c1_94 = arith.constant 1 : index
    %c0_95 = arith.constant 0 : index
    %c0_96 = arith.constant 0 : index
    %195 = vector.load %arg10[%c1_94, %c0_95, %c0_96] : memref<2x32x64xbf16, #tpu.memory_space<vmem>>, vector<1x32x64xbf16>
    %196 = vector.shape_cast %195 : vector<1x32x64xbf16> to vector<32x64xbf16>
    %197 = arith.truncf %194 : vector<64x8xf32> to vector<64x8xbf16>
    %cst_97 = arith.constant dense<0.000000e+00> : vector<32x8xf32>
    %198 = tpu.matmul %196, %197, %cst_97 {dimension_numbers = #tpu.dot_dimension_numbers<[1], [0], [0], [1], [0, 0, 1, 1], [], []>} : vector<32x64xbf16>, vector<64x8xbf16>, vector<32x8xf32> -> vector<32x8xf32>
    %c1_98 = arith.constant 1 : index
    %c0_99 = arith.constant 0 : index
    %c0_100 = arith.constant 0 : index
    %199 = vector.load %arg11[%c1_98, %c0_99, %c0_100] : memref<2x32x1xf32, #tpu.memory_space<vmem>>, vector<1x32x1xf32>
    %200 = vector.shape_cast %199 : vector<1x32x1xf32> to vector<32x1xf32>
    %201 = vector.broadcast %200 : vector<32x1xf32> to vector<32x8xf32>
    %202 = arith.addf %198, %201 : vector<32x8xf32>
    %c1_101 = arith.constant 1 : index
    %c0_102 = arith.constant 0 : index
    %c0_103 = arith.constant 0 : index
    %203 = vector.load %arg12[%c1_101, %c0_102, %c0_103] : memref<2x32x1xf32, #tpu.memory_space<vmem>>, vector<1x32x1xf32>
    %204 = vector.shape_cast %203 : vector<1x32x1xf32> to vector<32x1xf32>
    %c1_104 = arith.constant 1 : index
    %c0_105 = arith.constant 0 : index
    %c0_106 = arith.constant 0 : index
    %205 = vector.load %arg13[%c1_104, %c0_105, %c0_106] : memref<2x32x1xf32, #tpu.memory_space<vmem>>, vector<1x32x1xf32>
    %206 = vector.shape_cast %205 : vector<1x32x1xf32> to vector<32x1xf32>
    %207 = arith.addf %184, %202 : vector<32x8xf32>
    %cst_107 = arith.constant dense<0.000000e+00> : vector<8xf32>
    %208 = vector.multi_reduction <add>, %207, %cst_107 [0] : vector<32x8xf32> to vector<8xf32>
    %209 = vector.shape_cast %208 : vector<8xf32> to vector<1x8xf32>
    %cst_108 = arith.constant 3.200000e+01 : f32
    %210 = vector.broadcast %cst_108 : f32 to vector<1x8xf32>
    %211 = arith.divf %209, %210 : vector<1x8xf32>
    %212 = vector.broadcast %211 : vector<1x8xf32> to vector<32x8xf32>
    %213 = arith.subf %207, %212 : vector<32x8xf32>
    %214 = arith.mulf %213, %213 : vector<32x8xf32>
    %cst_109 = arith.constant dense<0.000000e+00> : vector<8xf32>
    %215 = vector.multi_reduction <add>, %214, %cst_109 [0] : vector<32x8xf32> to vector<8xf32>
    %216 = vector.shape_cast %215 : vector<8xf32> to vector<1x8xf32>
    %cst_110 = arith.constant 3.200000e+01 : f32
    %217 = vector.broadcast %cst_110 : f32 to vector<1x8xf32>
    %218 = arith.divf %216, %217 : vector<1x8xf32>
    %219 = vector.broadcast %211 : vector<1x8xf32> to vector<32x8xf32>
    %220 = arith.subf %207, %219 : vector<32x8xf32>
    %cst_111 = arith.constant 9.99999974E-6 : f32
    %221 = vector.broadcast %cst_111 : f32 to vector<1x8xf32>
    %222 = arith.addf %218, %221 : vector<1x8xf32>
    %223 = math.rsqrt %222 : vector<1x8xf32>
    %224 = vector.broadcast %223 : vector<1x8xf32> to vector<32x8xf32>
    %225 = arith.mulf %220, %224 : vector<32x8xf32>
    %226 = vector.broadcast %204 : vector<32x1xf32> to vector<32x8xf32>
    %227 = arith.mulf %225, %226 : vector<32x8xf32>
    %228 = vector.broadcast %206 : vector<32x1xf32> to vector<32x8xf32>
    %229 = arith.addf %227, %228 : vector<32x8xf32>
    %c0_112 = arith.constant 0 : index
    %c0_113 = arith.constant 0 : index
    %c0_114 = arith.constant 0 : index
    %230 = vector.load %arg14[%c0_112, %c0_113, %c0_114] : memref<1x32x8xf32, #tpu.memory_space<vmem>>, vector<1x32x8xf32>
    %231 = vector.shape_cast %230 : vector<1x32x8xf32> to vector<32x8xf32>
    %232 = vector.shape_cast %229 : vector<32x8xf32> to vector<1x32x8xf32>
    tpu.vector_store %arg14[%c0_112, %c0_113, %c0_114], %232 {strides = array<i32>} : memref<1x32x8xf32, #tpu.memory_space<vmem>>, vector<1x32x8xf32>,
    return
  }
  func.func @transform_0(%arg0: i32) -> (i32, i32, i32) {
    %c0_i32 = arith.constant 0 : i32
    %c0_i32_0 = arith.constant 0 : i32
    %c0_i32_1 = arith.constant 0 : i32
    return %arg0, %c0_i32, %c0_i32_0 : i32, i32, i32
  }
  func.func @transform_1(%arg0: i32) -> (i32, i32, i32) {
    %c0_i32 = arith.constant 0 : i32
    %c0_i32_0 = arith.constant 0 : i32
    %c0_i32_1 = arith.constant 0 : i32
    %c0_i32_2 = arith.constant 0 : i32
    return %c0_i32, %c0_i32_0, %c0_i32_1 : i32, i32, i32
  }
  func.func @transform_2(%arg0: i32) -> (i32, i32, i32) {
    %c0_i32 = arith.constant 0 : i32
    %c0_i32_0 = arith.constant 0 : i32
    %c0_i32_1 = arith.constant 0 : i32
    %c0_i32_2 = arith.constant 0 : i32
    return %c0_i32, %c0_i32_0, %c0_i32_1 : i32, i32, i32
  }
  func.func @transform_3(%arg0: i32) -> (i32, i32, i32) {
    %c0_i32 = arith.constant 0 : i32
    %c0_i32_0 = arith.constant 0 : i32
    %c0_i32_1 = arith.constant 0 : i32
    %c0_i32_2 = arith.constant 0 : i32
    return %c0_i32, %c0_i32_0, %c0_i32_1 : i32, i32, i32
  }
  func.func @transform_4(%arg0: i32) -> (i32, i32, i32) {
    %c0_i32 = arith.constant 0 : i32
    %c0_i32_0 = arith.constant 0 : i32
    %c0_i32_1 = arith.constant 0 : i32
    %c0_i32_2 = arith.constant 0 : i32
    return %c0_i32, %c0_i32_0, %c0_i32_1 : i32, i32, i32
  }
  func.func @transform_5(%arg0: i32) -> (i32, i32, i32) {
    %c0_i32 = arith.constant 0 : i32
    %c0_i32_0 = arith.constant 0 : i32
    %c0_i32_1 = arith.constant 0 : i32
    %c0_i32_2 = arith.constant 0 : i32
    return %c0_i32, %c0_i32_0, %c0_i32_1 : i32, i32, i32
  }
  func.func @transform_6(%arg0: i32) -> (i32, i32, i32) {
    %c0_i32 = arith.constant 0 : i32
    %c0_i32_0 = arith.constant 0 : i32
    %c0_i32_1 = arith.constant 0 : i32
    %c0_i32_2 = arith.constant 0 : i32
    return %c0_i32, %c0_i32_0, %c0_i32_1 : i32, i32, i32
  }
  func.func @transform_7(%arg0: i32) -> (i32, i32, i32) {
    %c0_i32 = arith.constant 0 : i32
    %c0_i32_0 = arith.constant 0 : i32
    %c0_i32_1 = arith.constant 0 : i32
    %c0_i32_2 = arith.constant 0 : i32
    return %c0_i32, %c0_i32_0, %c0_i32_1 : i32, i32, i32
  }
  func.func @transform_8(%arg0: i32) -> (i32, i32, i32) {
    %c0_i32 = arith.constant 0 : i32
    %c0_i32_0 = arith.constant 0 : i32
    %c0_i32_1 = arith.constant 0 : i32
    %c0_i32_2 = arith.constant 0 : i32
    return %c0_i32, %c0_i32_0, %c0_i32_1 : i32, i32, i32
  }
  func.func @transform_9(%arg0: i32) -> (i32, i32, i32) {
    %c0_i32 = arith.constant 0 : i32
    %c0_i32_0 = arith.constant 0 : i32
    %c0_i32_1 = arith.constant 0 : i32
    %c0_i32_2 = arith.constant 0 : i32
    return %c0_i32, %c0_i32_0, %c0_i32_1 : i32, i32, i32
  }
  func.func @transform_10(%arg0: i32) -> (i32, i32, i32) {
    %c0_i32 = arith.constant 0 : i32
    %c0_i32_0 = arith.constant 0 : i32
    %c0_i32_1 = arith.constant 0 : i32
    %c0_i32_2 = arith.constant 0 : i32
    return %c0_i32, %c0_i32_0, %c0_i32_1 : i32, i32, i32
  }
  func.func @transform_11(%arg0: i32) -> (i32, i32, i32) {
    %c0_i32 = arith.constant 0 : i32
    %c0_i32_0 = arith.constant 0 : i32
    %c0_i32_1 = arith.constant 0 : i32
    %c0_i32_2 = arith.constant 0 : i32
    return %c0_i32, %c0_i32_0, %c0_i32_1 : i32, i32, i32
  }
  func.func @transform_12(%arg0: i32) -> (i32, i32, i32) {
    %c0_i32 = arith.constant 0 : i32
    %c0_i32_0 = arith.constant 0 : i32
    %c0_i32_1 = arith.constant 0 : i32
    %c0_i32_2 = arith.constant 0 : i32
    return %c0_i32, %c0_i32_0, %c0_i32_1 : i32, i32, i32
  }
  func.func @transform_13(%arg0: i32) -> (i32, i32, i32) {
    %c0_i32 = arith.constant 0 : i32
    %c0_i32_0 = arith.constant 0 : i32
    %c0_i32_1 = arith.constant 0 : i32
    return %arg0, %c0_i32, %c0_i32_0 : i32, i32, i32
  }
}

</mosaic_0001>

<bundles_post_ra>
// kernel: _lambda_.1
= control target key start
LH: loop header
LB: loop body
LE: loop exit
PB: predicated region body
PF: predicated region fallthrough
CT: control target
= control target key end

     0   :  { %s3653_s25 = smov 0   ;;  %s4305_s0 = inlined_call_operand.vmem [shape: f32[2,32,8], index: 0, kind: input, shape index: {}]   ;;  %s4306_s1 = inlined_call_operand.vmem [shape: bf16[2,96,32], index: 1, kind: input, shape index: {}]   ;;  %s4307_s2 = inlined_call_operand.vmem [shape: f32[2,96,1], index: 2, kind: input, shape index: {}]   ;;  %s4308_s3 = inlined_call_operand.vmem [shape: bf16[2,32,32], index: 3, kind: input, shape index: {}]   ;;  %s4309_s4 = inlined_call_operand.vmem [shape: f32[2,32,1], index: 4, kind: input, shape index: {}]   ;;  %s4310_s5 = inlined_call_operand.vmem [shape: f32[2,32,1], index: 5, kind: input, shape index: {}]   ;;  %s4311_s6 = inlined_call_operand.vmem [shape: f32[2,32,1], index: 6, kind: input, shape index: {}]   ;;  %s4312_s7 = inlined_call_operand.vmem [shape: bf16[2,64,32], index: 7, kind: input, shape index: {}]   ;;  %s4313_s8 = inlined_call_operand.vmem [shape: f32[2,64,1], index: 8, kind: input, shape index: {}]   ;;  %s4314_s9 = inlined_call_operand.vmem [shape: bf16[2,32,64], index: 9, kind: input, shape index: {}]   ;;  %s4315_s10 = inlined_call_operand.vmem [shape: f32[2,32,1], index: 10, kind: input, shape index: {}]   ;;  %s4316_s11 = inlined_call_operand.vmem [shape: f32[2,32,1], index: 11, kind: input, shape index: {}]   ;;  %s4317_s12 = inlined_call_operand.vmem [shape: f32[2,32,1], index: 12, kind: input, shape index: {}]   ;;  %s4318_s13 = inlined_call_operand.vmem [shape: f32[2,32,8], index: 13, kind: output, shape index: {}]  }
   0x1 LB: > { %s3062_s26 = sadd.s32 4294967295, %s3578_s25   ;;  %p3066_p0 = scmp.ge.s32.totalorder %s3578_s25, 1  ;;  %s3578_s25 = sphi %s3653_s25, %s23_s25  }
   0x2   : > { %p387_p1 = scmp.lt.s32.totalorder %s3578_s25, 3 }
   0x4   : > { %p388_p2 = pnand %p3066_p0, %p387_p1 }
   0x5   : > { %p431_p3 = scmp.lt.s32.totalorder (!%p388_p2), %s3062_s26, 1  ;;  %v3504_v0 = vld [vmem:[%s4306_s1] sm:$0xff] (!%p388_p2)   ;;  %vm562_vm0 = vcmask (!%p388_p2), 261120   ;;  %v3580_v1 = vmov (!%p388_p2), 0   ;;  %v461_v3 = vld [vmem:[%s4307_s2 + $0x8] sm:$0xff] (!%p388_p2)  ;;  %v462_v4 = vld [vmem:[%s4307_s2 + $0x10] sm:$0xff] (!%p388_p2) }
   0x6   : > { %391 = sbr.rel (%p388_p2) target bundleno = 3898 (0xf3a), region = 72  ;;  %3303 = vmatprep.mubr.msk.bf16.mxu0 (!%p388_p2), %vm562_vm0, %v3504_v0  ;;  %3502 = vset.pattern.permute.xlu0 (!%p388_p2), %v3580_v1  ;;  %v460_v2 = vld [vmem:[%s4307_s2] sm:$0xff] (!%p388_p2)  ;;  %v463_v10 = vld [vmem:[%s4307_s2 + $0x18] sm:$0xff] (!%p388_p2)  ;;  %v465_v13 = vld [vmem:[%s4307_s2 + $0x28] sm:$0xff] (!%p388_p2)  ;;  %v3581_v19 = vmov (!%p388_p2), 0.0   ;;  %vm3582_vm1 = vmmov (!%p388_p2), 0  }
   0x7   : > { %3503 = vset.pattern.permute.xlu1 (!%p388_p2), %v3580_v1  ;;  %474 = vperm.xlu0 (!%p388_p2), %3502, %v460_v2   ;;  %v464_v12 = vld [vmem:[%s4307_s2 + $0x20] sm:$0xff] (!%p388_p2)  ;;  %v3505_v14 = vld [vmem:[%s4306_s1 + $0x8] sm:$0xff] (!%p388_p2)   ;;  %v3506_v15 = vld [vmem:[%s4306_s1 + $0x10] sm:$0xff] (!%p388_p2)   ;;  %vm694_vm2 = vcmask (!%p388_p2), 1043456   ;;  %vm690_vm3 = vcmask (!%p388_p2), 64512   ;;  %vm1563_vm4 = vcmask (!%p388_p2), 523264  }
   0x8   : > { %484 = vperm.xlu1 (!%p388_p2), %3503, %v462_v4   ;;  %v466_v16 = vld [vmem:[%s4307_s2 + $0x30] sm:$0xff] (!%p388_p2)  ;;  %v467_v17 = vld [vmem:[%s4307_s2 + $0x38] sm:$0xff] (!%p388_p2)  ;;  %3315 = vmatprep.subr.bf16.mxu1 (!%p388_p2), %v3581_v19  ;;  %v3508_v32 = vld [vmem:[%s4306_s1 + $0x20] sm:$0xff] (!%p388_p2)  }
   0x9   : > { %v3507_v18 = vld [vmem:[%s4306_s1 + $0x18] sm:$0xff] (!%p388_p2)   ;;  %3317 = vmatprep.mubr.msk.bf16.mxu1 (!%p388_p2), %vm3582_vm1, %v3581_v19  ;;  %v3509_v33 = vld [vmem:[%s4306_s1 + $0x28] sm:$0xff] (!%p388_p2)  }
   0xb   : > { %479 = vperm.xlu0 (!%p388_p2), %3502, %v461_v3  }
   0xc   : > { %489 = vperm.xlu1 (!%p388_p2), %3503, %v463_v10  }
   0xd   : > { %s4320_s26 = smov (!%p431_p3, %s3062_s26), 1 }
   0xe   : > { %s3217_s29 = sshll.u32 %s4320_s26, 5 }
   0xf   : > { %s435_s17 = scalar_lea.vmem %s4305_s0, %s3217_s29  ;;  %494 = vperm.xlu0 %3502, %v464_v12   ;;  %s440_s24 = scalar_lea.vmem %s4318_s13, %s3217_s29 }
  0x10   : > { %v3682_v5 = vld [vmem:[%s435_s17] sm:$0xff]  ;;  %v3684_v6 = vld [vmem:[%s435_s17 + $0x8] sm:$0xff]  ;;  %v3686_v7 = vld [vmem:[%s435_s17 + $0x10] sm:$0xff]  ;;  %499 = vperm.xlu1 %3503, %v465_v13  }
  0x11   : > { %v458_v8 = vpack.c.bf16 %v3684_v6, %v3682_v5  ;;  %v3690_v9 = vld [vmem:[%s435_s17 + $0x18] sm:$0xff] }
  0x12   : > { %v459_v11 = vpack.c.bf16 %v3690_v9, %v3686_v7 }
  0x13   : > { %3299 = vmatprep.subr.bf16.mxu0 %v458_v8  ;;  %504 = vperm.xlu0 %3502, %v466_v16  }
  0x14   : > { %3300 = vmatpush3.bf16.msra.mxu0 %v458_v8  ;;  %509 = vperm.xlu1 %3503, %v467_v17  }
  0x15   : > { %3301 = vmatprep.subr.bf16.mxu0 %v459_v11 }
  0x18   : > { %3302 = vmatpush3.bf16.msra.mxu0 %v459_v11 }
  0x19   : > { %3339 = vmatprep.subr.bf16.mxu0 %v3581_v19 }
  0x1b   : > { %3304 = vmatmul.mubr.msk.bf16.vlgmr.msra.gmra.mrb[0].mxu0 %vm562_vm0, %v3505_v14 }
  0x1c   : > { %3307 = vmatprep.mubr.msk.bf16.mxu0 %vm562_vm0, %v3506_v15 }
  0x23   : > { %3308 = vmatmul.mubr.msk.bf16.gmra.mrb[4].mxu0 %vm562_vm0, %v3507_v18 }
  0x24   : > { %3311 = vmatprep.mubr.msk.bf16.mxu0 %vm562_vm0, %v3508_v32 }
  0x2b   : > { %3312 = vmatmul.mubr.msk.bf16.gmra.mrb[8].mxu0 %vm562_vm0, %v3509_v33 }
  0x2c   : > { %3341 = vmatprep.mubr.msk.bf16.mxu0 %vm3582_vm1, %v3581_v19 }
  0x86   : > { %v475_v20 = vpop.permute.xlu0 %474 }
  0x87   : > { %v485_v21 = vpop.permute.xlu1 %484 }
  0x8a   : > { %v480_v26 = vpop.permute.xlu0 %479 }
  0x8b   : > { %v490_v31 = vpop.permute.xlu1 %489 }
  0x8e   : > { %v495_v38 = vpop.permute.xlu0 %494 }
  0x8f   : > { %v500_v46 = vpop.permute.xlu1 %499 }
  0x92   : > { %v505_v48 = vpop.permute.xlu0 %504 }
  0x93   : > { %v510_v53 = vpop.permute.xlu1 %509 }
  0xee   : > { %v3305_v22 = vpop.f32.mrb[0].mxu0 }
  0xef   : > { %v615_v23 = vpop.f32.mrb[1].mxu0  ;;  %v624_v28 = vadd.f32 %v3305_v22, %v485_v21 }
  0xf0   : > { %v616_v24 = vadd.f32 %v615_v23, %v475_v20  ;;  %v3306_v25 = vpop.f32.mrb[2].mxu0 }
  0xf1   : > { %v618_v27 = vpop.f32.mrb[3].mxu0  ;;  %v664_v35 = vpack.c.bf16 %v624_v28, %v624_v28  ;;  %v627_v36 = vadd.f32 %v3306_v25, %v490_v31 }
  0xf2   : > { %v662_v29 = vpack.c.bf16 %v616_v24, %v616_v24  ;;  %v619_v30 = vadd.f32 %v618_v27, %v480_v26  ;;  %v468_v27 = vld [vmem:[%s4307_s2 + $0x40] sm:$0xff] }
  0xf3   : > { %v665_v43 = vpack.c.bf16 %v627_v36, %v627_v36 }
  0xf4   : > { %v663_v34 = vpack.c.bf16 %v619_v30, %v619_v30  ;;  %674 = vxpose.xlu0.c.b16.start.end [1/1] (short) (narrow) %v662_v29, 16 }
  0xf6   : > { %v3309_v37 = vpop.f32.mrb[4].mxu0  ;;  %738 = vxpose.xlu1.c.b16.start.end [1/1] (short) (narrow) %v663_v34, 16 }
  0xf7   : > { %v631_v39 = vpop.f32.mrb[5].mxu0  ;;  %v640_v51 = vadd.f32 %v3309_v37, %v505_v48 }
  0xf8   : > { %v632_v40 = vadd.f32 %v631_v39, %v495_v38  ;;  %800 = vxpose.xlu0.c.b16.start.end [1/1] (short) (narrow) %v664_v35, 16  ;;  %v3310_v41 = vpop.f32.mrb[6].mxu0 }
  0xf9   : > { %v634_v42 = vpop.f32.mrb[7].mxu0  ;;  %v668_v54 = vpack.c.bf16 %v640_v51, %v640_v51  ;;  %v643_v57 = vadd.f32 %v3310_v41, %v510_v53  ;;  %v471_v51 = vld [vmem:[%s4307_s2 + $0x58] sm:$0xff]  ;;  %v1167_v53 = vld [vmem:[%s4309_s4 + $0x8] sm:$0xff] }
  0xfa   : > { %v666_v44 = vpack.c.bf16 %v632_v40, %v632_v40  ;;  %v635_v47 = vadd.f32 %v634_v42, %v500_v46 }
  0xfb   : > { %v820_v56 = vsel %vm694_vm2, %v668_v54, 0  ;;  %v669_v58 = vpack.c.bf16 %v643_v57, %v643_v57  ;;  %v1256_v57 = vld [vmem:[%s4310_s5 + $0x8] sm:$0xff] }
  0xfc   : > { %862 = vxpose.xlu0.c.b16.start.end [1/1] (short) (narrow) %v665_v43, 16  ;;  %v696_v45 = vsel %vm694_vm2, %v666_v44, 0  ;;  %v667_v49 = vpack.c.bf16 %v635_v47, %v635_v47 }
  0xfd   : > { %3316 = vmatpush3.bf16.msra.mxu1 %v696_v45  ;;  %v882_v60 = vsel %vm694_vm2, %v669_v58, 0  ;;  %v1166_v58 = vld [vmem:[%s4309_s4] sm:$0xff] }
  0xfe   : > { %3321 = vmatprep.subr.bf16.mxu1 %v3581_v19  ;;  %v758_v52 = vsel %vm694_vm2, %v667_v49, 0  ;;  %v3762_v28 = vpop.f32.mrb[8].mxu0 }
  0xff   : > { %v3764_v29 = vpop.f32.mrb[9].mxu0 }
 0x15a   : > { %v682_v50 = vpop.trf.xlu0 }
 0x15b   : > { %3318 = vmatmul.mubr.msk.bf16.vlgmr.msra.gmra.mrb[0].mxu1 %vm690_vm3, %v682_v50  ;;  %v470_v50 = vld [vmem:[%s4307_s2 + $0x50] sm:$0xff] }
 0x15c   : > { %3322 = vmatpush3.bf16.msra.mxu1 %v758_v52  ;;  %3323 = vmatprep.mubr.msk.bf16.mxu1 %vm3582_vm1, %v3581_v19  ;;  %v746_v55 = vpop.trf.xlu1  ;;  %v3788_v52 = vpop.f32.mrb[10].mxu0 }
 0x15d   : > { %3327 = vmatprep.subr.bf16.mxu1 %v3581_v19  ;;  %v3793_v54 = vpop.f32.mrb[11].mxu0 }
 0x15e   : > { %v808_v59 = vpop.trf.xlu0 }
 0x162   : > { %v870_v61 = vpop.trf.xlu0 }
 0x163   : > { %3324 = vmatmul.mubr.msk.bf16.vlgmr.msra.gmra.mrb[4].mxu1 %vm690_vm3, %v746_v55  ;;  %v1169_v55 = vld [vmem:[%s4309_s4 + $0x18] sm:$0xff] }
 0x164   : > { %3328 = vmatpush3.bf16.msra.mxu1 %v820_v56  ;;  %3329 = vmatprep.mubr.msk.bf16.mxu1 %vm3582_vm1, %v3581_v19  ;;  %v469_v56 = vld [vmem:[%s4307_s2 + $0x48] sm:$0xff] }
 0x165   : > { %3333 = vmatprep.subr.bf16.mxu1 %v3581_v19 }
 0x16b   : > { %3330 = vmatmul.mubr.msk.bf16.vlgmr.msra.gmra.mrb[8].mxu1 %vm690_vm3, %v808_v59  ;;  %v1260_v59 = vld [vmem:[%s4311_s6 + $0x8] sm:$0xff] }
 0x16c   : > { %3334 = vmatpush3.bf16.msra.mxu1 %v882_v60  ;;  %3335 = vmatprep.mubr.msk.bf16.mxu1 %vm3582_vm1, %v3581_v19  ;;  %v1168_v60 = vld [vmem:[%s4309_s4 + $0x10] sm:$0xff] }
 0x16d   : > { %3345 = vmatprep.subr.bf16.mxu1 %v3581_v19 }
 0x173   : > { %3336 = vmatmul.mubr.msk.bf16.vlgmr.msra.gmra.mrb[12].mxu1 %vm690_vm3, %v870_v61  ;;  %v1258_v61 = vld [vmem:[%s4310_s5 + $0x18] sm:$0xff] }
 0x174   : > { %3347 = vmatprep.mubr.msk.bf16.mxu1 %vm3582_vm1, %v3581_v19 }
 0x22e   : > { %v732_v62 = vpop.f32.mrb[0].mxu1 }
 0x22f   : > { %v924_v63 = vmul.f32 0.35355338, %v732_v62  ;;  %v3319_v0 = vpop.f32.mrb[1].mxu1  ;;  %v1255_v62 = vld [vmem:[%s4310_s5] sm:$0xff] }
 0x230   : > { %v735_v1 = vpop.f32.mrb[2].mxu1  ;;  %v1259_v0 = vld [vmem:[%s4311_s6] sm:$0xff] }
 0x231   : > { %v3320_v2 = vpop.f32.mrb[3].mxu1  ;;  %v928_v3 = vsel %vm690_vm3, %v924_v63, -inf  ;;  %v1369_v1 = vld [vmem:[%s4313_s8 + $0x8] sm:$0xff] }
 0x232   : > { %929 = vmax.xlane.f32.xlu1 %v928_v3  ;;  %v1257_v2 = vld [vmem:[%s4310_s5 + $0x10] sm:$0xff]  ;;  %v1371_v3 = vld [vmem:[%s4313_s8 + $0x18] sm:$0xff] }
 0x236   : > { %v794_v4 = vpop.f32.mrb[4].mxu1 }
 0x237   : > { %v925_v8 = vmul.f32 0.35355338, %v794_v4  ;;  %v3325_v10 = vpop.f32.mrb[5].mxu1  ;;  %v1261_v4 = vld [vmem:[%s4311_s6 + $0x10] sm:$0xff] }
 0x238   : > { %v797_v11 = vpop.f32.mrb[6].mxu1  ;;  %v1368_v10 = vld [vmem:[%s4313_s8] sm:$0xff] }
 0x239   : > { %v3326_v12 = vpop.f32.mrb[7].mxu1  ;;  %v931_v13 = vsel %vm690_vm3, %v925_v8, -inf  ;;  %v1375_v11 = vld [vmem:[%s4313_s8 + $0x38] sm:$0xff] }
 0x23a   : > { %932 = vmax.xlane.f32.xlu0 %v931_v13  ;;  %v1370_v12 = vld [vmem:[%s4313_s8 + $0x10] sm:$0xff]  ;;  %v1530_v13 = vld [vmem:[%s4315_s10 + $0x8] sm:$0xff] }
 0x23e   : > { %v856_v14 = vpop.f32.mrb[8].mxu1 }
 0x23f   : > { %v926_v15 = vmul.f32 0.35355338, %v856_v14  ;;  %v3331_v16 = vpop.f32.mrb[9].mxu1  ;;  %v1372_v14 = vld [vmem:[%s4313_s8 + $0x20] sm:$0xff] }
 0x240   : > { %v859_v17 = vpop.f32.mrb[10].mxu1  ;;  %v1374_v16 = vld [vmem:[%s4313_s8 + $0x30] sm:$0xff] }
 0x241   : > { %v3332_v18 = vpop.f32.mrb[11].mxu1  ;;  %v934_v20 = vsel %vm690_vm3, %v926_v15, -inf  ;;  %v1620_v17 = vld [vmem:[%s4316_s11 + $0x8] sm:$0xff] }
 0x242   : > { %935 = vmax.xlane.f32.xlu1 %v934_v20  ;;  %v1529_v18 = vld [vmem:[%s4315_s10] sm:$0xff]  ;;  %v1624_v20 = vld [vmem:[%s4317_s12 + $0x8] sm:$0xff] }
 0x246   : > { %v918_v21 = vpop.f32.mrb[12].mxu1 }
 0x247   : > { %v927_v22 = vmul.f32 0.35355338, %v918_v21  ;;  %v3337_v23 = vpop.f32.mrb[13].mxu1  ;;  %v1531_v21 = vld [vmem:[%s4315_s10 + $0x10] sm:$0xff] }
 0x248   : > { %v921_v24 = vpop.f32.mrb[14].mxu1  ;;  %v1619_v23 = vld [vmem:[%s4316_s11] sm:$0xff] }
 0x249   : > { %v3338_v25 = vpop.f32.mrb[15].mxu1  ;;  %v937_v26 = vsel %vm690_vm3, %v927_v22, -inf  ;;  %v1626_v24 = vld [vmem:[%s4317_s12 + $0x18] sm:$0xff] }
 0x24a   : > { %938 = vmax.xlane.f32.xlu0 %v937_v26  ;;  %v1623_v25 = vld [vmem:[%s4317_s12] sm:$0xff]  ;;  %v3120_v26 = vld [vmem:[%s4307_s2 + $0x68] sm:$0xff] }
 0x253   : > { %514 = vperm.xlu1 %3503, %v468_v27   ;;  %v1621_v27 = vld [vmem:[%s4316_s11 + $0x10] sm:$0xff] }
 0x2bf   : > { %v930_v30 = vpop.xlane.xlu1 %929 }
 0x2c0   : > { %v940_v31 = vsub.f32 %v924_v63, %v930_v30  ;;  %v1262_v63 = vld [vmem:[%s4311_s6 + $0x18] sm:$0xff] }
 0x2c1   : > { %v3122_v30 = vld [vmem:[%s4307_s2 + $0x78] sm:$0xff] }
 0x2c2   : > { %v944_v32 = vmul.f32 1.442695, %v940_v31  ;;  %v1625_v31 = vld [vmem:[%s4317_s12 + $0x10] sm:$0xff] }
 0x2c4   : > { %3532 = vpow2.f32 %v944_v32  ;;  %v3124_v32 = vld [vmem:[%s4307_s2 + $0x88] sm:$0xff] }
 0x2c7   : > { %v933_v33 = vpop.xlane.xlu0 %932 }
 0x2c8   : > { %v941_v34 = vsub.f32 %v925_v8, %v933_v33  ;;  %v1373_v8 = vld [vmem:[%s4313_s8 + $0x28] sm:$0xff]  ;;  %v3119_v33 = vld [vmem:[%s4307_s2 + $0x60] sm:$0xff] }
 0x2ca   : > { %v946_v35 = vmul.f32 1.442695, %v941_v34  ;;  %v3126_v34 = vld [vmem:[%s4307_s2 + $0x98] sm:$0xff] }
 0x2cc   : > { %3534 = vpow2.f32 %v946_v35  ;;  %v3121_v35 = vld [vmem:[%s4307_s2 + $0x70] sm:$0xff] }
 0x2ce   : > { %v3766_v36 = vpop.eup %3532 }
 0x2cf   : > { %v936_v37 = vpop.xlane.xlu1 %935  ;;  %v952_v38 = vsel %vm690_vm3, %v3766_v36, 0.0 }
 0x2d0   : > { %v942_v39 = vsub.f32 %v926_v15, %v936_v37  ;;  %953 = vadd.xlane.f32.xlu1 %v952_v38  ;;  %v1532_v15 = vld [vmem:[%s4315_s10 + $0x18] sm:$0xff]  ;;  %v3123_v37 = vld [vmem:[%s4307_s2 + $0x80] sm:$0xff]  ;;  %v3125_v38 = vld [vmem:[%s4307_s2 + $0x90] sm:$0xff] }
 0x2d2   : > { %v948_v40 = vmul.f32 1.442695, %v942_v39 }
 0x2d3   : > { %v515_v39 = vpop.permute.xlu1 %514 }
 0x2d4   : > { %3536 = vpow2.f32 %v948_v40 }
 0x2d6   : > { %v3770_v41 = vpop.eup %3534 }
 0x2d7   : > { %v939_v42 = vpop.xlane.xlu0 %938  ;;  %v955_v43 = vsel %vm690_vm3, %v3770_v41, 0.0 }
 0x2d8   : > { %v943_v44 = vsub.f32 %v927_v22, %v939_v42  ;;  %956 = vadd.xlane.f32.xlu0 %v955_v43  ;;  %v1622_v22 = vld [vmem:[%s4316_s11 + $0x18] sm:$0xff] }
 0x2da   : > { %v950_v45 = vmul.f32 1.442695, %v943_v44 }
 0x2dc   : > { %3538 = vpow2.f32 %v950_v45 }
 0x2de   : > { %v3774_v46 = vpop.eup %3536 }
 0x2df   : > { %v958_v47 = vsel %vm690_vm3, %v3774_v46, 0.0 }
 0x2e0   : > { %959 = vadd.xlane.f32.xlu1 %v958_v47 }
 0x2e6   : > { %v3778_v48 = vpop.eup %3538 }
 0x2e7   : > { %v961_v49 = vsel %vm690_vm3, %v3778_v48, 0.0 }
 0x2e8   : > { %962 = vadd.xlane.f32.xlu0 %v961_v49 }
 0x2f1   : > { %524 = vperm.xlu1 %3503, %v470_v50   ;;  %v648_v50 = vadd.f32 %v3764_v29, %v515_v39 }
 0x2f5   : > { %529 = vperm.xlu1 %3503, %v471_v51  }
 0x2f9   : > { %1177 = vperm.xlu1 %3503, %v1167_v53  }
 0x2fd   : > { %1187 = vperm.xlu1 %3503, %v1169_v55   ;;  %v670_v55 = vpack.c.bf16 %v648_v50, %v648_v50 }
 0x2fe   : > { %519 = vperm.xlu0 %3502, %v469_v56  }
 0x301   : > { %1317 = vperm.xlu1 %3503, %v1256_v57  }
 0x302   : > { %1172 = vperm.xlu0 %3502, %v1166_v58  }
 0x305   : > { %1341 = vperm.xlu1 %3503, %v1260_v59  }
 0x306   : > { %1182 = vperm.xlu0 %3502, %v1168_v60  }
 0x309   : > { %1327 = vperm.xlu1 %3503, %v1258_v61  }
 0x30a   : > { %1312 = vperm.xlu0 %3502, %v1255_v62  }
 0x30d   : > { %1351 = vperm.xlu1 %3503, %v1262_v63  }
 0x30e   : > { %1336 = vperm.xlu0 %3502, %v1259_v0  }
 0x311   : > { %1383 = vperm.xlu1 %3503, %v1369_v1  }
 0x312   : > { %1322 = vperm.xlu0 %3502, %v1257_v2  }
 0x315   : > { %1393 = vperm.xlu1 %3503, %v1371_v3  }
 0x316   : > { %1346 = vperm.xlu0 %3502, %v1261_v4  }
 0x319   : > { %1403 = vperm.xlu1 %3503, %v1373_v8  }
 0x31a   : > { %1378 = vperm.xlu0 %3502, %v1368_v10  }
 0x31d   : > { %1413 = vperm.xlu1 %3503, %v1375_v11  }
 0x31e   : > { %1388 = vperm.xlu0 %3502, %v1370_v12  }
 0x321   : > { %1540 = vperm.xlu1 %3503, %v1530_v13  }
 0x322   : > { %1398 = vperm.xlu0 %3502, %v1372_v14  }
 0x325   : > { %1550 = vperm.xlu1 %3503, %v1532_v15  }
 0x326   : > { %1408 = vperm.xlu0 %3502, %v1374_v16  }
 0x329   : > { %1680 = vperm.xlu1 %3503, %v1620_v17  }
 0x32a   : > { %1535 = vperm.xlu0 %3502, %v1529_v18  }
 0x32d   : > { %1704 = vperm.xlu1 %3503, %v1624_v20  }
 0x32e   : > { %1545 = vperm.xlu0 %3502, %v1531_v21  }
 0x331   : > { %1690 = vperm.xlu1 %3503, %v1622_v22  }
 0x332   : > { %1675 = vperm.xlu0 %3502, %v1619_v23  }
 0x335   : > { %1714 = vperm.xlu1 %3503, %v1626_v24  }
 0x336   : > { %1699 = vperm.xlu0 %3502, %v1623_v25  }
 0x339   : > { %1756 = vperm.xlu1 %3503, %v3120_v26  }
 0x33a   : > { %1685 = vperm.xlu0 %3502, %v1621_v27  }
 0x33d   : > { %1766 = vperm.xlu1 %3503, %v3122_v30   ;;  %v3511_v30 = vld [vmem:[%s4308_s3 + $0x8] sm:$0xff]  }
 0x33e   : > { %1709 = vperm.xlu0 %3502, %v1625_v31   ;;  %v3512_v31 = vld [vmem:[%s4312_s7] sm:$0xff]  }
 0x341   : > { %1776 = vperm.xlu1 %3503, %v3124_v32  }
 0x342   : > { %1751 = vperm.xlu0 %3502, %v3119_v33  }
 0x345   : > { %1786 = vperm.xlu1 %3503, %v3126_v34  }
 0x346   : > { %1761 = vperm.xlu0 %3502, %v3121_v35  }
 0x34a   : > { %1771 = vperm.xlu0 %3502, %v3123_v37  }
 0x34e   : > { %1781 = vperm.xlu0 %3502, %v3125_v38  }
 0x35d   : > { %v954_v40 = vpop.xlane.xlu1 %953 }
 0x35e   : > { %3540 = vrcp.f32 %v954_v40 }
 0x365   : > { %v957_v42 = vpop.xlane.xlu0 %956 }
 0x366   : > { %3542 = vrcp.f32 %v957_v42 }
 0x368   : > { %v3541_v43 = vpop.eup %3540 }
 0x369   : > { %v968_v44 = vmul.f32 %v3541_v43, %v3766_v36 }
 0x36b   : > { %v972_v45 = vpack.c.bf16 %v968_v44, %v968_v44 }
 0x36d   : > { %v960_v47 = vpop.xlane.xlu1 %959  ;;  %v980_v49 = vsel %vm690_vm3, %v972_v45, 0 }
 0x36e   : > { %3544 = vrcp.f32 %v960_v47  ;;  %3340 = vmatpush3.bf16.xpose.msra.mxu0 %v980_v49 }
 0x36f   : > { %3351 = vmatprep.subr.bf16.mxu0 %v3581_v19 }
 0x370   : > { %v3543_v51 = vpop.eup %3542 }
 0x371   : > { %v969_v53 = vmul.f32 %v3543_v51, %v3770_v41  ;;  %v525_v60 = vpop.permute.xlu1 %524 }
 0x372   : > { %v656_v63 = vadd.f32 %v3762_v28, %v525_v60 }
 0x373   : > { %v973_v56 = vpack.c.bf16 %v969_v53, %v969_v53 }
 0x374   : > { %v672_v3 = vpack.c.bf16 %v656_v63, %v656_v63 }
 0x375   : > { %3342 = vmatmul.mubr.msk.bf16.vlgmr.msra.gmra.mrb[12].mxu0 %vm690_vm3, %v670_v55  ;;  %v963_v57 = vpop.xlane.xlu0 %962  ;;  %v1026_v36 = vsel %vm690_vm3, %v973_v56, 0 }
 0x376   : > { %3546 = vrcp.f32 %v963_v57  ;;  %3346 = vmatpush3.bf16.xpose.msra.mxu1 %v1026_v36  ;;  %3353 = vmatprep.mubr.msk.bf16.mxu0 %vm3582_vm1, %v3581_v19 }
 0x377   : > { %3357 = vmatprep.subr.bf16.mxu1 %v3581_v19 }
 0x378   : > { %v3545_v29 = vpop.eup %3544 }
 0x379   : > { %v970_v58 = vmul.f32 %v3545_v29, %v3774_v46  ;;  %v530_v46 = vpop.permute.xlu1 %529 }
 0x37b   : > { %v974_v59 = vpack.c.bf16 %v970_v58, %v970_v58 }
 0x37d   : > { %v520_v41 = vpop.permute.xlu0 %519  ;;  %v1072_v61 = vsel %vm690_vm3, %v974_v59, 0  ;;  %v1178_v33 = vpop.permute.xlu1 %1177 }
 0x37e   : > { %v651_v62 = vadd.f32 %v3793_v54, %v520_v41  ;;  %3352 = vmatpush3.bf16.xpose.msra.mxu0 %v1072_v61  ;;  %v659_v54 = vadd.f32 %v3788_v52, %v530_v46 }
 0x380   : > { %v3547_v0 = vpop.eup %3546  ;;  %v671_v1 = vpack.c.bf16 %v651_v62, %v651_v62  ;;  %v673_v28 = vpack.c.bf16 %v659_v54, %v659_v54 }
 0x381   : > { %v971_v2 = vmul.f32 %v3547_v0, %v3778_v48  ;;  %v3510_v48 = vld [vmem:[%s4308_s3] sm:$0xff]   ;;  %v1173_v32 = vpop.permute.xlu0 %1172  ;;  %v1188_v42 = vpop.permute.xlu1 %1187 }
 0x382   : > { %3348 = vmatmul.mubr.msk.bf16.vlgmr.msra.gmra.mrb[16].mxu1 %vm690_vm3, %v671_v1 }
 0x383   : > { %v975_v4 = vpack.c.bf16 %v971_v2, %v971_v2  ;;  %3359 = vmatprep.mubr.msk.bf16.mxu1 %vm3582_vm1, %v3581_v19 }
 0x385   : > { %3354 = vmatmul.mubr.msk.bf16.vlgmr.msra.gmra.mrb[16].mxu0 %vm690_vm3, %v672_v3  ;;  %v1118_v8 = vsel %vm690_vm3, %v975_v4, 0  ;;  %v1183_v35 = vpop.permute.xlu0 %1182 }
 0x386   : > { %3358 = vmatpush3.bf16.xpose.msra.mxu1 %v1118_v8  ;;  %3367 = vmatprep.mubr.msk.bf16.mxu0 %vm562_vm0, %v3510_v48 }
 0x38d   : > { %3360 = vmatmul.mubr.msk.bf16.vlgmr.msra.gmra.mrb[20].mxu1 %vm690_vm3, %v673_v28 }
 0x38e   : > { %3375 = vmatprep.mubr.msk.bf16.mxu1 %vm562_vm0, %v3512_v31 }
 0x448   : > { %v1016_v10 = vpop.f32.mrb[12].mxu0 }
 0x449   : > { %v3343_v11 = vpop.f32.mrb[13].mxu0 }
 0x44a   : > { %v1019_v12 = vpop.f32.mrb[14].mxu0 }
 0x44b   : > { %v3344_v13 = vpop.f32.mrb[15].mxu0 }
 0x455   : > { %v1062_v14 = vpop.f32.mrb[16].mxu1 }
 0x456   : > { %v1164_v15 = vpack.c.bf16 %v1062_v14, %v1016_v10  ;;  %v3349_v16 = vpop.f32.mrb[17].mxu1 }
 0x457   : > { %v1065_v17 = vpop.f32.mrb[18].mxu1 }
 0x458   : > { %v3350_v18 = vpop.f32.mrb[19].mxu1  ;;  %v1108_v20 = vpop.f32.mrb[16].mxu0  ;;  %3363 = vmatprep.subr.bf16.mxu0 %v1164_v15 }
 0x459   : > { %v3355_v52 = vpop.f32.mrb[17].mxu0  ;;  %3364 = vmatpush3.bf16.msra.mxu0 %v1164_v15  ;;  %v1318_v18 = vpop.permute.xlu1 %1317 }
 0x45a   : > { %v1111_v21 = vpop.f32.mrb[18].mxu0 }
 0x45b   : > { %v3356_v22 = vpop.f32.mrb[19].mxu0 }
 0x45d   : > { %v1342_v22 = vpop.permute.xlu1 %1341 }
 0x460   : > { %v1154_v23 = vpop.f32.mrb[20].mxu1 }
 0x461   : > { %v1165_v24 = vpack.c.bf16 %v1154_v23, %v1108_v20  ;;  %v3361_v25 = vpop.f32.mrb[21].mxu1  ;;  %v1313_v20 = vpop.permute.xlu0 %1312 }
 0x462   : > { %v1157_v26 = vpop.f32.mrb[22].mxu1 }
 0x463   : > { %v3362_v27 = vpop.f32.mrb[23].mxu1  ;;  %3365 = vmatprep.subr.bf16.mxu0 %v1165_v24 }
 0x464   : > { %3366 = vmatpush3.bf16.msra.mxu0 %v1165_v24  ;;  %v1328_v24 = vpop.permute.xlu1 %1327 }
 0x465   : > { %v1337_v23 = vpop.permute.xlu0 %1336 }
 0x467   : > { %3368 = vmatmul.mubr.msk.bf16.vlgmr.msra.gmra.mrb[20].mxu0 %vm562_vm0, %v3511_v30 }
 0x469   : > { %v1323_v25 = vpop.permute.xlu0 %1322 }
 0x53a   : > { %v3369_v34 = vpop.f32.mrb[20].mxu0 }
 0x53b   : > { %v1240_v37 = vpop.f32.mrb[21].mxu0  ;;  %v1249_v38 = vadd.f32 %v3369_v34, %v1183_v35 }
 0x53c   : > { %v1241_v39 = vadd.f32 %v1240_v37, %v1173_v32  ;;  %v3370_v40 = vpop.f32.mrb[22].mxu0 }
 0x53d   : > { %v1243_v43 = vpop.f32.mrb[23].mxu0  ;;  %v1252_v45 = vadd.f32 %v3370_v40, %v1188_v42  ;;  %v1265_v49 = vadd.f32 %v1249_v38, %v3686_v7  ;;  %v1352_v38 = vpop.permute.xlu1 %1351 }
 0x53e   : > { %v1263_v44 = vadd.f32 %v1241_v39, %v3682_v5  ;;  %v1244_v47 = vadd.f32 %v1243_v43, %v1178_v33  ;;  %v1347_v39 = vpop.permute.xlu0 %1346 }
 0x53f   : > { %v1266_v53 = vadd.f32 %v1252_v45, %v3690_v9  ;;  %v1270_v57 = vsel %vm690_vm3, %v1265_v49, 0.0 }
 0x540   : > { %v1264_v50 = vadd.f32 %v1244_v47, %v3684_v6  ;;  %v1267_v51 = vsel %vm690_vm3, %v1263_v44, 0.0 }
 0x541   : > { %v1272_v29 = vsel %vm690_vm3, %v1266_v53, 0.0 }
 0x542   : > { %v1268_v55 = vsel %vm690_vm3, %v1264_v50, 0.0 }
 0x543   : > { %v1269_v56 = vadd.f32 %v1268_v55, %v1267_v51  ;;  %v3515_v51 = vld [vmem:[%s4312_s7 + $0x18] sm:$0xff]   ;;  %v1379_v55 = vpop.permute.xlu0 %1378 }
 0x545   : > { %v1271_v36 = vadd.f32 %v1270_v57, %v1269_v56  ;;  %v1384_v56 = vpop.permute.xlu1 %1383 }
 0x547   : > { %v1273_v58 = vadd.f32 %v1272_v29, %v1271_v36  ;;  %v1389_v57 = vpop.permute.xlu0 %1388 }
 0x549   : > { %v1274_v5 = vrot.slane %v1273_v58, 4  ;;  %v1394_v36 = vpop.permute.xlu1 %1393 }
 0x54b   : > { %v1275_v59 = vadd.f32 %v1274_v5, %v1273_v58 }
 0x54d   : > { %v1276_v60 = vrot.slane %v1275_v59, 2 }
 0x54f   : > { %v1277_v41 = vadd.f32 %v1276_v60, %v1275_v59  ;;  %v1399_v59 = vpop.permute.xlu0 %1398 }
 0x551   : > { %v1278_v7 = vrot.slane %v1277_v41, 1 }
 0x553   : > { %v1279_v61 = vadd.f32 %v1278_v7, %v1277_v41 }
 0x555   : > { %v1281_v6 = vmul.f32 0.03125, %v1279_v61 }
 0x557   : > { %v1282_v62 = vsub.f32 %v1263_v44, %v1281_v6  ;;  %v1283_v63 = vsub.f32 %v1264_v50, %v1281_v6  ;;  %v1284_v0 = vsub.f32 %v1265_v49, %v1281_v6  ;;  %v1285_v9 = vsub.f32 %v1266_v53, %v1281_v6  ;;  %v3513_v49 = vld [vmem:[%s4312_s7 + $0x8] sm:$0xff]   ;;  %v3514_v50 = vld [vmem:[%s4312_s7 + $0x10] sm:$0xff]   ;;  %v3516_v53 = vld [vmem:[%s4314_s9] sm:$0xff]   ;;  %v1404_v6 = vpop.permute.xlu1 %1403 }
 0x558   : > { %3391 = vmatprep.mubr.msk.bf16.mxu0 %vm1563_vm4, %v3516_v53 }
 0x559   : > { %v1286_v1 = vmul.f32 %v1282_v62, %v1282_v62  ;;  %v1287_v2 = vmul.f32 %v1283_v63, %v1283_v63  ;;  %v1288_v3 = vmul.f32 %v1284_v0, %v1284_v0  ;;  %v1289_v4 = vmul.f32 %v1285_v9, %v1285_v9 }
 0x55b   : > { %v1290_v46 = vsel %vm690_vm3, %v1286_v1, 0.0  ;;  %v1291_v8 = vsel %vm690_vm3, %v1287_v2, 0.0  ;;  %v1293_v28 = vsel %vm690_vm3, %v1288_v3, 0.0  ;;  %v1295_v10 = vsel %vm690_vm3, %v1289_v4, 0.0  ;;  %v1409_v3 = vpop.permute.xlu0 %1408 }
 0x55c   : > { %v1292_v54 = vadd.f32 %v1291_v8, %v1290_v46 }
 0x55e   : > { %v1294_v48 = vadd.f32 %v1293_v28, %v1292_v54  ;;  %v1414_v28 = vpop.permute.xlu1 %1413 }
 0x560   : > { %v1296_v11 = vadd.f32 %v1295_v10, %v1294_v48 }
 0x562   : > { %v1297_v12 = vrot.slane %v1296_v11, 4 }
 0x564   : > { %v1298_v13 = vadd.f32 %v1297_v12, %v1296_v11 }
 0x566   : > { %v1299_v14 = vrot.slane %v1298_v13, 2 }
 0x568   : > { %v1300_v15 = vadd.f32 %v1299_v14, %v1298_v13 }
 0x56a   : > { %v1301_v16 = vrot.slane %v1300_v15, 1 }
 0x56c   : > { %v1302_v17 = vadd.f32 %v1301_v16, %v1300_v15 }
 0x56e   : > { %v1303_v52 = vmul.f32 0.03125, %v1302_v17 }
 0x570   : > { %v1304_v21 = vadd.f32 1e-05, %v1303_v52  ;;  %v3517_v52 = vld [vmem:[%s4314_s9 + $0x8] sm:$0xff]  }
 0x572   : > { %3548 = vrsqrt.f32 %v1304_v21  ;;  %v3518_v21 = vld [vmem:[%s4306_s1 + $0x30] sm:$0xff]  }
 0x57c   : > { %v3549_v26 = vpop.eup %3548 }
 0x57d   : > { %v1307_v27 = vmul.f32 %v3549_v26, %v1283_v63  ;;  %v1306_v30 = vmul.f32 %v3549_v26, %v1282_v62  ;;  %v1308_v31 = vmul.f32 %v3549_v26, %v1284_v0  ;;  %v1309_v32 = vmul.f32 %v3549_v26, %v1285_v9 }
 0x57f   : > { %v1330_v33 = vmul.f32 %v1313_v20, %v1306_v30  ;;  %v1331_v34 = vmul.f32 %v1318_v18, %v1307_v27  ;;  %v1332_v35 = vmul.f32 %v1323_v25, %v1308_v31  ;;  %v1333_v37 = vmul.f32 %v1328_v24, %v1309_v32 }
 0x581   : > { %v3961_v40 = vadd.f32 %v1337_v23, %v1330_v33  ;;  %v3963_v42 = vadd.f32 %v1342_v22, %v1331_v34  ;;  %v3965_v43 = vadd.f32 %v1347_v39, %v1332_v35  ;;  %v3967_v44 = vadd.f32 %v1352_v38, %v1333_v37  ;;  %v1536_v22 = vpop.permute.xlu0 %1535  ;;  %v1541_v23 = vpop.permute.xlu1 %1540 }
 0x583   : > { %v1366_v45 = vpack.c.bf16 %v3963_v42, %v3961_v40  ;;  %v1367_v47 = vpack.c.bf16 %v3967_v44, %v3965_v43 }
 0x585   : > { %3371 = vmatprep.subr.bf16.mxu1 %v1366_v45  ;;  %v1546_v25 = vpop.permute.xlu0 %1545  ;;  %v1551_v32 = vpop.permute.xlu1 %1550 }
 0x586   : > { %3372 = vmatpush3.bf16.msra.mxu1 %v1366_v45 }
 0x587   : > { %3373 = vmatprep.subr.bf16.mxu1 %v1367_v47 }
 0x58a   : > { %3374 = vmatpush3.bf16.msra.mxu1 %v1367_v47 }
 0x58d   : > { %3376 = vmatmul.mubr.msk.bf16.vlgmr.msra.gmra.mrb[24].mxu1 %vm562_vm0, %v3513_v49 }
 0x58e   : > { %3379 = vmatprep.mubr.msk.bf16.mxu1 %vm562_vm0, %v3514_v50 }
 0x595   : > { %3380 = vmatmul.mubr.msk.bf16.gmra.mrb[28].mxu1 %vm562_vm0, %v3515_v51 }
 0x596   : > { %3399 = vmatprep.mubr.msk.bf16.mxu1 %vm562_vm0, %v3518_v21 }
 0x660   : > { %v3377_v29 = vpop.f32.mrb[24].mxu1 }
 0x661   : > { %v1491_v58 = vadd.f32 %v3377_v29, %v1389_v57  ;;  %v1482_v5 = vpop.f32.mrb[25].mxu1 }
 0x662   : > { %v1483_v60 = vadd.f32 %v1482_v5, %v1379_v55  ;;  %v3378_v41 = vpop.f32.mrb[26].mxu1 }
 0x663   : > { %v1494_v7 = vadd.f32 %v3378_v41, %v1394_v36  ;;  %v1485_v61 = vpop.f32.mrb[27].mxu1  ;;  %v1515_v63 = vmax.f32 %v1491_v58, 0.0 }
 0x664   : > { %v1486_v62 = vadd.f32 %v1485_v61, %v1384_v56  ;;  %v1513_v9 = vmax.f32 %v1483_v60, 0.0 }
 0x665   : > { %v1516_v0 = vmax.f32 %v1494_v7, 0.0 }
 0x666   : > { %v1514_v1 = vmax.f32 %v1486_v62, 0.0 }
 0x667   : > { %v1526_v2 = vpack.c.bf16 %v1516_v0, %v1515_v63 }
 0x668   : > { %v1525_v4 = vpack.c.bf16 %v1514_v1, %v1513_v9  ;;  %v3381_v46 = vpop.f32.mrb[28].mxu1 }
 0x669   : > { %v1507_v8 = vadd.f32 %v3381_v46, %v1409_v3  ;;  %v1498_v54 = vpop.f32.mrb[29].mxu1 }
 0x66a   : > { %v1499_v48 = vadd.f32 %v1498_v54, %v1399_v59  ;;  %v3382_v10 = vpop.f32.mrb[30].mxu1  ;;  %3383 = vmatprep.subr.bf16.mxu0 %v1525_v4 }
 0x66b   : > { %v1510_v11 = vadd.f32 %v3382_v10, %v1414_v28  ;;  %v1501_v12 = vpop.f32.mrb[31].mxu1  ;;  %3384 = vmatpush3.bf16.msra.mxu0 %v1525_v4  ;;  %v1519_v14 = vmax.f32 %v1507_v8, 0.0  ;;  %v1681_v10 = vpop.permute.xlu1 %1680 }
 0x66c   : > { %v1502_v13 = vadd.f32 %v1501_v12, %v1404_v6  ;;  %3385 = vmatprep.subr.bf16.mxu0 %v1526_v2  ;;  %v1517_v16 = vmax.f32 %v1499_v48, 0.0 }
 0x66d   : > { %v1520_v15 = vmax.f32 %v1510_v11, 0.0  ;;  %v1676_v11 = vpop.permute.xlu0 %1675 }
 0x66e   : > { %v1518_v17 = vmax.f32 %v1502_v13, 0.0 }
 0x66f   : > { %v1528_v18 = vpack.c.bf16 %v1520_v15, %v1519_v14  ;;  %3386 = vmatpush3.bf16.msra.mxu0 %v1526_v2  ;;  %v1705_v14 = vpop.permute.xlu1 %1704 }
 0x670   : > { %v1527_v20 = vpack.c.bf16 %v1518_v17, %v1517_v16 }
 0x671   : > { %v1700_v15 = vpop.permute.xlu0 %1699 }
 0x672   : > { %3387 = vmatprep.subr.bf16.mxu0 %v1527_v20 }
 0x673   : > { %3388 = vmatpush3.bf16.msra.mxu0 %v1527_v20  ;;  %v1691_v16 = vpop.permute.xlu1 %1690 }
 0x674   : > { %3389 = vmatprep.subr.bf16.mxu0 %v1528_v18 }
 0x675   : > { %v1686_v17 = vpop.permute.xlu0 %1685 }
 0x677   : > { %3390 = vmatpush3.bf16.msra.mxu0 %v1528_v18 }
 0x678   : > { %3411 = vmatprep.subr.bf16.mxu0 %v3581_v19 }
 0x67a   : > { %3392 = vmatmul.mubr.msk.bf16.vlgmr.msra.gmra.mrb[24].mxu0 %vm1563_vm4, %v3517_v52 }
 0x67b   : > { %3413 = vmatprep.mubr.msk.bf16.mxu0 %vm3582_vm1, %v3581_v19 }
 0x74d   : > { %v3393_v24 = vpop.f32.mrb[24].mxu0 }
 0x74e   : > { %v1604_v26 = vpop.f32.mrb[25].mxu0  ;;  %v1613_v27 = vadd.f32 %v3393_v24, %v1546_v25 }
 0x74f   : > { %v1605_v30 = vadd.f32 %v1604_v26, %v1536_v22  ;;  %v3394_v31 = vpop.f32.mrb[26].mxu0 }
 0x750   : > { %v1607_v33 = vpop.f32.mrb[27].mxu0  ;;  %v1616_v35 = vadd.f32 %v3394_v31, %v1551_v32  ;;  %v1629_v38 = vadd.f32 %v1613_v27, %v3965_v43  ;;  %v1715_v27 = vpop.permute.xlu1 %1714 }
 0x751   : > { %v1627_v34 = vadd.f32 %v1605_v30, %v3961_v40  ;;  %v1608_v37 = vadd.f32 %v1607_v33, %v1541_v23  ;;  %v1710_v30 = vpop.permute.xlu0 %1709 }
 0x752   : > { %v1630_v47 = vadd.f32 %v1616_v35, %v3967_v44  ;;  %v1634_v51 = vsel %vm690_vm3, %v1629_v38, 0.0 }
 0x753   : > { %v1628_v39 = vadd.f32 %v1608_v37, %v3963_v42  ;;  %v1631_v45 = vsel %vm690_vm3, %v1627_v34, 0.0 }
 0x754   : > { %v1636_v55 = vsel %vm690_vm3, %v1630_v47, 0.0 }
 0x755   : > { %v1632_v49 = vsel %vm690_vm3, %v1628_v39, 0.0 }
 0x756   : > { %v1633_v50 = vadd.f32 %v1632_v49, %v1631_v45  ;;  %v3521_v45 = vld [vmem:[%s4306_s1 + $0x48] sm:$0xff]   ;;  %v3523_v49 = vld [vmem:[%s4306_s1 + $0x58] sm:$0xff]  }
 0x758   : > { %v1635_v53 = vadd.f32 %v1634_v51, %v1633_v50  ;;  %v1757_v50 = vpop.permute.xlu1 %1756  ;;  %v1752_v51 = vpop.permute.xlu0 %1751 }
 0x75a   : > { %v1637_v56 = vadd.f32 %v1636_v55, %v1635_v53 }
 0x75c   : > { %v1638_v40 = vrot.slane %v1637_v56, 4  ;;  %v1767_v53 = vpop.permute.xlu1 %1766 }
 0x75e   : > { %v1639_v57 = vadd.f32 %v1638_v40, %v1637_v56 }
 0x760   : > { %v1640_v36 = vrot.slane %v1639_v57, 2 }
 0x762   : > { %v1641_v29 = vadd.f32 %v1640_v36, %v1639_v57  ;;  %v1762_v36 = vpop.permute.xlu0 %1761 }
 0x764   : > { %v1642_v43 = vrot.slane %v1641_v29, 1 }
 0x766   : > { %v1643_v58 = vadd.f32 %v1642_v43, %v1641_v29  ;;  %v1777_v43 = vpop.permute.xlu1 %1776 }
 0x768   : > { %v1644_v42 = vmul.f32 0.03125, %v1643_v58 }
 0x76a   : > { %v1645_v5 = vsub.f32 %v1627_v34, %v1644_v42  ;;  %v1646_v59 = vsub.f32 %v1628_v39, %v1644_v42  ;;  %v1647_v60 = vsub.f32 %v1629_v38, %v1644_v42  ;;  %v1648_v44 = vsub.f32 %v1630_v47, %v1644_v42  ;;  %v3519_v38 = vld [vmem:[%s4306_s1 + $0x38] sm:$0xff]   ;;  %v3520_v39 = vld [vmem:[%s4306_s1 + $0x40] sm:$0xff]   ;;  %v3522_v47 = vld [vmem:[%s4306_s1 + $0x50] sm:$0xff]  }
 0x76c   : > { %v1649_v41 = vmul.f32 %v1645_v5, %v1645_v5  ;;  %v1650_v7 = vmul.f32 %v1646_v59, %v1646_v59  ;;  %v1651_v61 = vmul.f32 %v1647_v60, %v1647_v60  ;;  %v1652_v6 = vmul.f32 %v1648_v44, %v1648_v44 }
 0x76e   : > { %v1653_v62 = vsel %vm690_vm3, %v1649_v41, 0.0  ;;  %v1654_v63 = vsel %vm690_vm3, %v1650_v7, 0.0  ;;  %v1656_v9 = vsel %vm690_vm3, %v1651_v61, 0.0  ;;  %v1658_v2 = vsel %vm690_vm3, %v1652_v6, 0.0  ;;  %v1772_v7 = vpop.permute.xlu0 %1771  ;;  %v1787_v6 = vpop.permute.xlu1 %1786 }
 0x76f   : > { %v1655_v0 = vadd.f32 %v1654_v63, %v1653_v62 }
 0x771   : > { %v1657_v1 = vadd.f32 %v1656_v9, %v1655_v0 }
 0x773   : > { %v1659_v3 = vadd.f32 %v1658_v2, %v1657_v1 }
 0x775   : > { %v1660_v4 = vrot.slane %v1659_v3, 4 }
 0x777   : > { %v1661_v46 = vadd.f32 %v1660_v4, %v1659_v3 }
 0x779   : > { %v1662_v8 = vrot.slane %v1661_v46, 2 }
 0x77b   : > { %v1663_v54 = vadd.f32 %v1662_v8, %v1661_v46 }
 0x77d   : > { %v1664_v28 = vrot.slane %v1663_v54, 1 }
 0x77f   : > { %v1665_v48 = vadd.f32 %v1664_v28, %v1663_v54  ;;  %v1782_v54 = vpop.permute.xlu0 %1781 }
 0x781   : > { %v1666_v12 = vmul.f32 0.03125, %v1665_v48 }
 0x783   : > { %v1667_v13 = vadd.f32 1e-05, %v1666_v12 }
 0x785   : > { %3550 = vrsqrt.f32 %v1667_v13 }
 0x78f   : > { %v3551_v18 = vpop.eup %3550 }
 0x790   : > { %v1670_v20 = vmul.f32 %v3551_v18, %v1646_v59  ;;  %v1669_v52 = vmul.f32 %v3551_v18, %v1645_v5  ;;  %v1671_v21 = vmul.f32 %v3551_v18, %v1647_v60  ;;  %v1672_v22 = vmul.f32 %v3551_v18, %v1648_v44 }
 0x792   : > { %v1693_v23 = vmul.f32 %v1676_v11, %v1669_v52  ;;  %v1694_v24 = vmul.f32 %v1681_v10, %v1670_v20  ;;  %v1695_v25 = vmul.f32 %v1686_v17, %v1671_v21  ;;  %v1696_v26 = vmul.f32 %v1691_v16, %v1672_v22 }
 0x794   : > { %v4012_v31 = vadd.f32 %v1700_v15, %v1693_v23  ;;  %v4014_v32 = vadd.f32 %v1705_v14, %v1694_v24  ;;  %v4016_v33 = vadd.f32 %v1710_v30, %v1695_v25  ;;  %v4018_v34 = vadd.f32 %v1715_v27, %v1696_v26 }
 0x796   : > { %v1734_v35 = vpack.c.bf16 %v4014_v32, %v4012_v31  ;;  %v1735_v37 = vpack.c.bf16 %v4018_v34, %v4016_v33 }
 0x798   : > { %3395 = vmatprep.subr.bf16.mxu1 %v1734_v35 }
 0x799   : > { %3396 = vmatpush3.bf16.msra.mxu1 %v1734_v35 }
 0x79a   : > { %3397 = vmatprep.subr.bf16.mxu1 %v1735_v37 }
 0x79d   : > { %3398 = vmatpush3.bf16.msra.mxu1 %v1735_v37 }
 0x79e   : > { %3429 = vmatprep.subr.bf16.mxu1 %v3581_v19 }
 0x7a0   : > { %3400 = vmatmul.mubr.msk.bf16.vlgmr.msra.gmra.mrb[32].mxu1 %vm562_vm0, %v3519_v38 }
 0x7a1   : > { %3403 = vmatprep.mubr.msk.bf16.mxu1 %vm562_vm0, %v3520_v39 }
 0x7a8   : > { %3404 = vmatmul.mubr.msk.bf16.gmra.mrb[36].mxu1 %vm562_vm0, %v3521_v45 }
 0x7a9   : > { %3407 = vmatprep.mubr.msk.bf16.mxu1 %vm562_vm0, %v3522_v47 }
 0x7b0   : > { %3408 = vmatmul.mubr.msk.bf16.gmra.mrb[40].mxu1 %vm562_vm0, %v3523_v49 }
 0x7b1   : > { %3431 = vmatprep.mubr.msk.bf16.mxu1 %vm3582_vm1, %v3581_v19 }
 0x873   : > { %v3401_v55 = vpop.f32.mrb[32].mxu1 }
 0x874   : > { %v1891_v56 = vpop.f32.mrb[33].mxu1  ;;  %v1900_v58 = vadd.f32 %v3401_v55, %v1762_v36 }
 0x875   : > { %v1892_v40 = vadd.f32 %v1891_v56, %v1752_v51  ;;  %v3402_v57 = vpop.f32.mrb[34].mxu1 }
 0x876   : > { %v1894_v29 = vpop.f32.mrb[35].mxu1  ;;  %v1940_v60 = vpack.c.bf16 %v1900_v58, %v1900_v58  ;;  %v1903_v44 = vadd.f32 %v3402_v57, %v1767_v53 }
 0x877   : > { %v1938_v42 = vpack.c.bf16 %v1892_v40, %v1892_v40  ;;  %v1895_v5 = vadd.f32 %v1894_v29, %v1757_v50 }
 0x878   : > { %v1941_v1 = vpack.c.bf16 %v1903_v44, %v1903_v44 }
 0x879   : > { %v1939_v59 = vpack.c.bf16 %v1895_v5, %v1895_v5  ;;  %1950 = vxpose.xlu0.c.b16.start.end [1/1] (short) (narrow) %v1938_v42, 16 }
 0x87b   : > { %v3405_v41 = vpop.f32.mrb[36].mxu1  ;;  %2012 = vxpose.xlu1.c.b16.start.end [1/1] (short) (narrow) %v1939_v59, 16 }
 0x87c   : > { %v1907_v61 = vpop.f32.mrb[37].mxu1  ;;  %v1916_v10 = vadd.f32 %v3405_v41, %v1782_v54  ;;  %v3155_v54 = vld [vmem:[%s4309_s4 + $0x20] sm:$0xff] }
 0x87d   : > { %v1908_v62 = vadd.f32 %v1907_v61, %v1772_v7  ;;  %v3406_v63 = vpop.f32.mrb[38].mxu1  ;;  %2074 = vxpose.xlu0.c.b16.start.end [1/1] (short) (narrow) %v1940_v60, 16 }
 0x87e   : > { %v1919_v0 = vadd.f32 %v3406_v63, %v1787_v6  ;;  %v1910_v9 = vpop.f32.mrb[39].mxu1  ;;  %v1944_v13 = vpack.c.bf16 %v1916_v10, %v1916_v10 }
 0x87f   : > { %v1942_v2 = vpack.c.bf16 %v1908_v62, %v1908_v62  ;;  %v1911_v8 = vadd.f32 %v1910_v9, %v1777_v43  ;;  %v3127_v43 = vld [vmem:[%s4307_s2 + $0xa0] sm:$0xff] }
 0x880   : > { %v1945_v3 = vpack.c.bf16 %v1919_v0, %v1919_v0  ;;  %v2094_v16 = vsel %vm694_vm2, %v1944_v13, 0  ;;  %v3165_v13 = vld [vmem:[%s4310_s5 + $0x30] sm:$0xff] }
 0x881   : > { %v1970_v4 = vsel %vm694_vm2, %v1942_v2, 0  ;;  %2136 = vxpose.xlu0.c.b16.start.end [1/1] (short) (narrow) %v1941_v1, 16  ;;  %v1943_v28 = vpack.c.bf16 %v1911_v8, %v1911_v8  ;;  %v3129_v1 = vld [vmem:[%s4307_s2 + $0xb0] sm:$0xff]  ;;  %v3128_v8 = vld [vmem:[%s4307_s2 + $0xa8] sm:$0xff] }
 0x882   : > { %v2156_v46 = vsel %vm694_vm2, %v1945_v3, 0  ;;  %3412 = vmatpush3.bf16.msra.mxu0 %v1970_v4 }
 0x883   : > { %3430 = vmatpush3.bf16.msra.mxu1 %v2156_v46  ;;  %3417 = vmatprep.subr.bf16.mxu0 %v3581_v19  ;;  %v2032_v11 = vsel %vm694_vm2, %v1943_v28, 0  ;;  %v4067_v17 = vpop.f32.mrb[40].mxu1  ;;  %v3157_v28 = vld [vmem:[%s4309_s4 + $0x30] sm:$0xff] }
 0x884   : > { %3441 = vmatprep.subr.bf16.mxu1 %v3581_v19  ;;  %v4069_v18 = vpop.f32.mrb[41].mxu1 }
 0x885   : > { %v4071_v20 = vpop.f32.mrb[42].mxu1 }
 0x886   : > { %v4073_v52 = vpop.f32.mrb[43].mxu1 }
 0x8df   : > { %v1958_v48 = vpop.trf.xlu0 }
 0x8e0   : > { %3414 = vmatmul.mubr.msk.bf16.vlgmr.msra.gmra.mrb[28].mxu0 %vm690_vm3, %v1958_v48  ;;  %v3163_v48 = vld [vmem:[%s4310_s5 + $0x20] sm:$0xff] }
 0x8e1   : > { %3418 = vmatpush3.bf16.msra.mxu0 %v2032_v11  ;;  %3419 = vmatprep.mubr.msk.bf16.mxu0 %vm3582_vm1, %v3581_v19  ;;  %v2020_v14 = vpop.trf.xlu1  ;;  %v3167_v11 = vld [vmem:[%s4311_s6 + $0x20] sm:$0xff] }
 0x8e2   : > { %3423 = vmatprep.subr.bf16.mxu0 %v3581_v19 }
 0x8e3   : > { %v2082_v12 = vpop.trf.xlu0 }
 0x8e7   : > { %v2144_v15 = vpop.trf.xlu0 }
 0x8e8   : > { %3420 = vmatmul.mubr.msk.bf16.vlgmr.msra.gmra.mrb[32].mxu0 %vm690_vm3, %v2020_v14  ;;  %3432 = vmatmul.mubr.msk.bf16.vlgmr.msra.gmra.mrb[44].mxu1 %vm690_vm3, %v2144_v15  ;;  %v3169_v14 = vld [vmem:[%s4311_s6 + $0x30] sm:$0xff]  ;;  %v3179_v15 = vld [vmem:[%s4313_s8 + $0x40] sm:$0xff] }
 0x8e9   : > { %3424 = vmatpush3.bf16.msra.mxu0 %v2094_v16  ;;  %3425 = vmatprep.mubr.msk.bf16.mxu0 %vm3582_vm1, %v3581_v19  ;;  %v3130_v16 = vld [vmem:[%s4307_s2 + $0xb8] sm:$0xff] }
 0x8ea   : > { %3435 = vmatprep.subr.bf16.mxu0 %v3581_v19  ;;  %3443 = vmatprep.mubr.msk.bf16.mxu1 %vm3582_vm1, %v3581_v19 }
 0x8f0   : > { %3426 = vmatmul.mubr.msk.bf16.vlgmr.msra.gmra.mrb[36].mxu0 %vm690_vm3, %v2082_v12 }
 0x8f1   : > { %3437 = vmatprep.mubr.msk.bf16.mxu0 %vm3582_vm1, %v3581_v19 }
 0x9b3   : > { %v2006_v21 = vpop.f32.mrb[28].mxu0 }
 0x9b4   : > { %v2198_v22 = vmul.f32 0.35355338, %v2006_v21  ;;  %v3415_v23 = vpop.f32.mrb[29].mxu0  ;;  %v3181_v21 = vld [vmem:[%s4313_s8 + $0x50] sm:$0xff] }
 0x9b5   : > { %v2009_v24 = vpop.f32.mrb[30].mxu0  ;;  %v3183_v23 = vld [vmem:[%s4313_s8 + $0x60] sm:$0xff] }
 0x9b6   : > { %v2202_v25 = vsel %vm690_vm3, %v2198_v22, -inf  ;;  %v3416_v26 = vpop.f32.mrb[31].mxu0  ;;  %v3158_v24 = vld [vmem:[%s4309_s4 + $0x38] sm:$0xff] }
 0x9b7   : > { %2203 = vmax.xlane.f32.xlu1 %v2202_v25  ;;  %v3185_v25 = vld [vmem:[%s4313_s8 + $0x70] sm:$0xff]  ;;  %v3164_v26 = vld [vmem:[%s4310_s5 + $0x28] sm:$0xff] }
 0x9bb   : > { %v2068_v27 = vpop.f32.mrb[32].mxu0  ;;  %v2192_v30 = vpop.f32.mrb[44].mxu1 }
 0x9bc   : > { %v2199_v35 = vmul.f32 0.35355338, %v2068_v27  ;;  %v2201_v37 = vmul.f32 0.35355338, %v2192_v30  ;;  %v3421_v38 = vpop.f32.mrb[33].mxu0  ;;  %v3433_v39 = vpop.f32.mrb[45].mxu1 }
 0x9bd   : > { %v2071_v45 = vpop.f32.mrb[34].mxu0  ;;  %v2195_v47 = vpop.f32.mrb[46].mxu1  ;;  %v3199_v27 = vld [vmem:[%s4315_s10 + $0x20] sm:$0xff]  ;;  %v3168_v30 = vld [vmem:[%s4311_s6 + $0x28] sm:$0xff]  ;;  %v3170_v39 = vld [vmem:[%s4311_s6 + $0x38] sm:$0xff] }
 0x9be   : > { %v2205_v49 = vsel %vm690_vm3, %v2199_v35, -inf  ;;  %v3422_v50 = vpop.f32.mrb[35].mxu0  ;;  %v3434_v51 = vpop.f32.mrb[47].mxu1  ;;  %v2211_v53 = vsel %vm690_vm3, %v2201_v37, -inf  ;;  %v3207_v38 = vld [vmem:[%s4316_s11 + $0x20] sm:$0xff]  ;;  %v3209_v45 = vld [vmem:[%s4316_s11 + $0x30] sm:$0xff] }
 0x9bf   : > { %2206 = vmax.xlane.f32.xlu0 %v2205_v49  ;;  %v3180_v47 = vld [vmem:[%s4313_s8 + $0x48] sm:$0xff]  ;;  %v3211_v49 = vld [vmem:[%s4317_s12 + $0x20] sm:$0xff]  ;;  %v3182_v50 = vld [vmem:[%s4313_s8 + $0x58] sm:$0xff] }
 0x9c0   : > { %v3213_v51 = vld [vmem:[%s4317_s12 + $0x30] sm:$0xff] }
 0x9c3   : > { %v2130_v55 = vpop.f32.mrb[36].mxu0  ;;  %2212 = vmax.xlane.f32.xlu0 %v2211_v53  ;;  %v3184_v53 = vld [vmem:[%s4313_s8 + $0x68] sm:$0xff] }
 0x9c4   : > { %v2200_v56 = vmul.f32 0.35355338, %v2130_v55  ;;  %v3427_v40 = vpop.f32.mrb[37].mxu0  ;;  %v3186_v55 = vld [vmem:[%s4313_s8 + $0x78] sm:$0xff] }
 0x9c5   : > { %v2133_v57 = vpop.f32.mrb[38].mxu0  ;;  %v3202_v40 = vld [vmem:[%s4315_s10 + $0x38] sm:$0xff] }
 0x9c6   : > { %v2208_v36 = vsel %vm690_vm3, %v2200_v56, -inf  ;;  %v3428_v29 = vpop.f32.mrb[39].mxu0  ;;  %v3208_v57 = vld [vmem:[%s4316_s11 + $0x28] sm:$0xff] }
 0x9c7   : > { %2209 = vmax.xlane.f32.xlu1 %v2208_v36  ;;  %v3210_v36 = vld [vmem:[%s4316_s11 + $0x38] sm:$0xff]  ;;  %v3212_v29 = vld [vmem:[%s4317_s12 + $0x28] sm:$0xff] }
 0x9d8   : > { %1791 = vperm.xlu1 %3503, %v3127_v43   ;;  %v3214_v43 = vld [vmem:[%s4317_s12 + $0x38] sm:$0xff] }
 0xa44   : > { %v2204_v58 = vpop.xlane.xlu1 %2203 }
 0xa45   : > { %v2214_v42 = vsub.f32 %v2198_v22, %v2204_v58  ;;  %v3156_v22 = vld [vmem:[%s4309_s4 + $0x28] sm:$0xff] }
 0xa47   : > { %v2218_v5 = vmul.f32 1.442695, %v2214_v42 }
 0xa49   : > { %3552 = vpow2.f32 %v2218_v5 }
 0xa4c   : > { %v2207_v59 = vpop.xlane.xlu0 %2206 }
 0xa4d   : > { %v2215_v60 = vsub.f32 %v2199_v35, %v2207_v59  ;;  %v3201_v35 = vld [vmem:[%s4315_s10 + $0x30] sm:$0xff] }
 0xa4f   : > { %v2220_v61 = vmul.f32 1.442695, %v2215_v60 }
 0xa50   : > { %v2213_v44 = vpop.xlane.xlu0 %2212 }
 0xa51   : > { %v2217_v41 = vsub.f32 %v2201_v37, %v2213_v44  ;;  %v3166_v37 = vld [vmem:[%s4310_s5 + $0x38] sm:$0xff] }
 0xa53   : > { %v4082_v7 = vpop.eup %3552  ;;  %v2224_v6 = vmul.f32 1.442695, %v2217_v41 }
 0xa54   : > { %v2226_v62 = vsel %vm690_vm3, %v4082_v7, 0.0  ;;  %v2210_v3 = vpop.xlane.xlu1 %2209 }
 0xa55   : > { %3554 = vpow2.f32 %v2224_v6  ;;  %2227 = vadd.xlane.f32.xlu1 %v2226_v62  ;;  %v2216_v4 = vsub.f32 %v2200_v56, %v2210_v3  ;;  %v3200_v56 = vld [vmem:[%s4315_s10 + $0x28] sm:$0xff] }
 0xa56   : > { %3556 = vpow2.f32 %v2220_v61 }
 0xa57   : > { %v2222_v46 = vmul.f32 1.442695, %v2216_v4 }
 0xa58   : > { %v1792_v58 = vpop.permute.xlu1 %1791 }
 0xa59   : > { %3558 = vpow2.f32 %v2222_v46  ;;  %v1924_v6 = vadd.f32 %v4069_v18, %v1792_v58 }
 0xa5b   : > { %v1946_v62 = vpack.c.bf16 %v1924_v6, %v1924_v6 }
 0xa5f   : > { %v4086_v63 = vpop.eup %3554 }
 0xa60   : > { %v2235_v0 = vsel %vm690_vm3, %v4086_v63, 0.0  ;;  %v4090_v9 = vpop.eup %3556 }
 0xa61   : > { %2236 = vadd.xlane.f32.xlu0 %v2235_v0  ;;  %v2229_v2 = vsel %vm690_vm3, %v4090_v9, 0.0 }
 0xa63   : > { %v4109_v10 = vpop.eup %3558 }
 0xa64   : > { %v2232_v12 = vsel %vm690_vm3, %v4109_v10, 0.0 }
 0xa65   : > { %2230 = vadd.xlane.f32.xlu0 %v2229_v2 }
 0xa66   : > { %1801 = vperm.xlu1 %3503, %v3129_v1  }
 0xa7b   : > { %1796 = vperm.xlu0 %3502, %v3128_v8  }
 0xa7f   : > { %2448 = vperm.xlu0 %3502, %v3155_v54  }
 0xa83   : > { %2458 = vperm.xlu0 %3502, %v3157_v28  }
 0xa87   : > { %2589 = vperm.xlu0 %3502, %v3163_v48  }
 0xa8a   : > { %2233 = vadd.xlane.f32.xlu1 %v2232_v12 }
 0xa8b   : > { %2613 = vperm.xlu0 %3502, %v3167_v11  }
 0xa8f   : > { %2599 = vperm.xlu0 %3502, %v3165_v13  }
 0xa93   : > { %2623 = vperm.xlu0 %3502, %v3169_v14  }
 0xa97   : > { %2657 = vperm.xlu0 %3502, %v3179_v15  }
 0xa9b   : > { %1806 = vperm.xlu1 %3503, %v3130_v16   ;;  %2667 = vperm.xlu0 %3502, %v3181_v21  }
 0xa9f   : > { %2453 = vperm.xlu1 %3503, %v3156_v22   ;;  %2677 = vperm.xlu0 %3502, %v3183_v23  }
 0xaa3   : > { %2463 = vperm.xlu1 %3503, %v3158_v24   ;;  %2687 = vperm.xlu0 %3502, %v3185_v25  }
 0xaa7   : > { %2594 = vperm.xlu1 %3503, %v3164_v26   ;;  %2816 = vperm.xlu0 %3502, %v3199_v27  }
 0xaab   : > { %2618 = vperm.xlu1 %3503, %v3168_v30   ;;  %2826 = vperm.xlu0 %3502, %v3201_v35  }
 0xaaf   : > { %2604 = vperm.xlu1 %3503, %v3166_v37   ;;  %2957 = vperm.xlu0 %3502, %v3207_v38  }
 0xab3   : > { %2628 = vperm.xlu1 %3503, %v3170_v39   ;;  %2967 = vperm.xlu0 %3502, %v3209_v45  }
 0xab7   : > { %2662 = vperm.xlu1 %3503, %v3180_v47   ;;  %2981 = vperm.xlu0 %3502, %v3211_v49  }
 0xabb   : > { %2672 = vperm.xlu1 %3503, %v3182_v50   ;;  %2991 = vperm.xlu0 %3502, %v3213_v51   ;;  %v3525_v51 = vld [vmem:[%s4308_s3 + $0x18] sm:$0xff]  }
 0xabf   : > { %2682 = vperm.xlu1 %3503, %v3184_v53   ;;  %v3526_v53 = vld [vmem:[%s4312_s7 + $0x20] sm:$0xff]  }
 0xac3   : > { %2692 = vperm.xlu1 %3503, %v3186_v55  }
 0xac7   : > { %2821 = vperm.xlu1 %3503, %v3200_v56  }
 0xacb   : > { %2831 = vperm.xlu1 %3503, %v3202_v40  }
 0xacf   : > { %2962 = vperm.xlu1 %3503, %v3208_v57  }
 0xad3   : > { %2972 = vperm.xlu1 %3503, %v3210_v36  }
 0xad7   : > { %2986 = vperm.xlu1 %3503, %v3212_v29  }
 0xadb   : > { %2996 = vperm.xlu1 %3503, %v3214_v43  }
 0xae2   : > { %v2228_v42 = vpop.xlane.xlu1 %2227 }
 0xae3   : > { %3560 = vrcp.f32 %v2228_v42 }
 0xaed   : > { %v3561_v5 = vpop.eup %3560 }
 0xaee   : > { %v2237_v59 = vpop.xlane.xlu0 %2236  ;;  %v2242_v60 = vmul.f32 %v3561_v5, %v4082_v7 }
 0xaf0   : > { %v2246_v44 = vpack.c.bf16 %v2242_v60, %v2242_v60 }
 0xaf2   : > { %v2231_v41 = vpop.xlane.xlu0 %2230  ;;  %v2254_v61 = vsel %vm690_vm3, %v2246_v44, 0 }
 0xaf3   : > { %3562 = vrcp.f32 %v2231_v41  ;;  %3436 = vmatpush3.bf16.xpose.msra.mxu0 %v2254_v61 }
 0xaf4   : > { %3447 = vmatprep.subr.bf16.mxu0 %v3581_v19  ;;  %3564 = vrcp.f32 %v2237_v59 }
 0xafa   : > { %3438 = vmatmul.mubr.msk.bf16.vlgmr.msra.gmra.mrb[40].mxu0 %vm690_vm3, %v1946_v62  ;;  %v1797_v3 = vpop.permute.xlu0 %1796 }
 0xafb   : > { %3449 = vmatprep.mubr.msk.bf16.mxu0 %vm3582_vm1, %v3581_v19  ;;  %v1927_v18 = vadd.f32 %v4073_v52, %v1797_v3 }
 0xafd   : > { %v3563_v0 = vpop.eup %3562  ;;  %v1947_v54 = vpack.c.bf16 %v1927_v18, %v1927_v18 }
 0xafe   : > { %v2243_v7 = vmul.f32 %v3563_v0, %v4090_v9  ;;  %v3565_v1 = vpop.eup %3564  ;;  %v1802_v9 = vpop.permute.xlu1 %1801 }
 0xaff   : > { %v2245_v46 = vmul.f32 %v3565_v1, %v4086_v63  ;;  %v1932_v16 = vadd.f32 %v4067_v17, %v1802_v9  ;;  %v2449_v55 = vpop.permute.xlu0 %2448 }
 0xb00   : > { %v2247_v2 = vpack.c.bf16 %v2243_v7, %v2243_v7 }
 0xb01   : > { %v2249_v8 = vpack.c.bf16 %v2245_v46, %v2245_v46  ;;  %v1948_v21 = vpack.c.bf16 %v1932_v16, %v1932_v16 }
 0xb02   : > { %v2300_v4 = vsel %vm690_vm3, %v2247_v2, 0 }
 0xb03   : > { %3442 = vmatpush3.bf16.xpose.msra.mxu1 %v2300_v4  ;;  %v2392_v28 = vsel %vm690_vm3, %v2249_v8, 0  ;;  %v2459_v57 = vpop.permute.xlu0 %2458 }
 0xb04   : > { %3453 = vmatprep.subr.bf16.mxu1 %v3581_v19 }
 0xb0a   : > { %3444 = vmatmul.mubr.msk.bf16.vlgmr.msra.gmra.mrb[48].mxu1 %vm690_vm3, %v1947_v54 }
 0xb0b   : > { %3454 = vmatpush3.bf16.xpose.msra.mxu1 %v2392_v28  ;;  %3455 = vmatprep.mubr.msk.bf16.mxu1 %vm3582_vm1, %v3581_v19  ;;  %v3524_v19 = vld [vmem:[%s4308_s3 + $0x10] sm:$0xff]  }
 0xb17   : > { %v2234_v48 = vpop.xlane.xlu1 %2233 }
 0xb18   : > { %3566 = vrcp.f32 %v2234_v48 }
 0xb1b   : > { %v1807_v11 = vpop.permute.xlu1 %1806 }
 0xb1c   : > { %v1935_v63 = vadd.f32 %v4071_v20, %v1807_v11 }
 0xb1e   : > { %v1949_v12 = vpack.c.bf16 %v1935_v63, %v1935_v63 }
 0xb1f   : > { %v2454_v56 = vpop.permute.xlu1 %2453 }
 0xb20   : > { %3456 = vmatmul.mubr.msk.bf16.vlgmr.msra.gmra.mrb[52].mxu1 %vm690_vm3, %v1949_v12 }
 0xb21   : > { %3471 = vmatprep.mubr.msk.bf16.mxu1 %vm562_vm0, %v3526_v53 }
 0xb22   : > { %v3567_v52 = vpop.eup %3566 }
 0xb23   : > { %v2244_v13 = vmul.f32 %v3567_v52, %v4109_v10  ;;  %v2464_v42 = vpop.permute.xlu1 %2463 }
 0xb25   : > { %v2248_v14 = vpack.c.bf16 %v2244_v13, %v2244_v13 }
 0xb27   : > { %v2346_v15 = vsel %vm690_vm3, %v2248_v14, 0 }
 0xb28   : > { %3448 = vmatpush3.bf16.xpose.msra.mxu0 %v2346_v15 }
 0xb2f   : > { %3450 = vmatmul.mubr.msk.bf16.vlgmr.msra.gmra.mrb[44].mxu0 %vm690_vm3, %v1948_v21 }
 0xb30   : > { %3463 = vmatprep.mubr.msk.bf16.mxu0 %vm562_vm0, %v3524_v19 }
 0xbcd   : > { %v2290_v20 = vpop.f32.mrb[40].mxu0 }
 0xbce   : > { %v3439_v22 = vpop.f32.mrb[41].mxu0 }
 0xbcf   : > { %v2293_v23 = vpop.f32.mrb[42].mxu0 }
 0xbd0   : > { %v3440_v24 = vpop.f32.mrb[43].mxu0 }
 0xbdd   : > { %v2336_v10 = vpop.f32.mrb[48].mxu1 }
 0xbde   : > { %v2439_v25 = vpack.c.bf16 %v2336_v10, %v2290_v20  ;;  %v3445_v26 = vpop.f32.mrb[49].mxu1 }
 0xbdf   : > { %v2339_v27 = vpop.f32.mrb[50].mxu1 }
 0xbe0   : > { %v3446_v30 = vpop.f32.mrb[51].mxu1  ;;  %3459 = vmatprep.subr.bf16.mxu0 %v2439_v25  ;;  %v2590_v27 = vpop.permute.xlu0 %2589 }
 0xbe1   : > { %3460 = vmatpush3.bf16.msra.mxu0 %v2439_v25  ;;  %v2595_v30 = vpop.permute.xlu1 %2594 }
 0xbf3   : > { %v2428_v17 = vpop.f32.mrb[52].mxu1 }
 0xbf4   : > { %v3457_v35 = vpop.f32.mrb[53].mxu1 }
 0xbf5   : > { %v2431_v37 = vpop.f32.mrb[54].mxu1 }
 0xbf6   : > { %v3458_v38 = vpop.f32.mrb[55].mxu1  ;;  %v2614_v37 = vpop.permute.xlu0 %2613 }
 0xbf7   : > { %v2619_v38 = vpop.permute.xlu1 %2618 }
 0xc02   : > { %v2382_v39 = vpop.f32.mrb[44].mxu0 }
 0xc03   : > { %v2440_v45 = vpack.c.bf16 %v2428_v17, %v2382_v39  ;;  %v3451_v47 = vpop.f32.mrb[45].mxu0  ;;  %v2600_v39 = vpop.permute.xlu0 %2599 }
 0xc04   : > { %v2385_v49 = vpop.f32.mrb[46].mxu0 }
 0xc05   : > { %v3452_v50 = vpop.f32.mrb[47].mxu0  ;;  %3461 = vmatprep.subr.bf16.mxu0 %v2440_v45 }
 0xc06   : > { %3462 = vmatpush3.bf16.msra.mxu0 %v2440_v45  ;;  %v2605_v45 = vpop.permute.xlu1 %2604 }
 0xc09   : > { %3464 = vmatmul.mubr.msk.bf16.vlgmr.msra.gmra.mrb[48].mxu0 %vm562_vm0, %v3525_v51 }
 0xcdc   : > { %v3465_v40 = vpop.f32.mrb[48].mxu0 }
 0xcdd   : > { %v2516_v36 = vpop.f32.mrb[49].mxu0  ;;  %v2525_v29 = vadd.f32 %v3465_v40, %v2459_v57 }
 0xcde   : > { %v2517_v43 = vadd.f32 %v2516_v36, %v2449_v55  ;;  %v3466_v58 = vpop.f32.mrb[50].mxu0  ;;  %v2624_v36 = vpop.permute.xlu0 %2623 }
 0xcdf   : > { %v2519_v5 = vpop.f32.mrb[51].mxu0  ;;  %v2528_v60 = vadd.f32 %v3466_v58, %v2464_v42  ;;  %v2543_v41 = vadd.f32 %v2525_v29, %v4016_v33  ;;  %v2629_v29 = vpop.permute.xlu1 %2628 }
 0xce0   : > { %v2541_v59 = vadd.f32 %v2517_v43, %v4012_v31  ;;  %v2520_v44 = vadd.f32 %v2519_v5, %v2454_v56 }
 0xce1   : > { %v2544_v62 = vadd.f32 %v2528_v60, %v4018_v34  ;;  %v2548_v1 = vsel %vm690_vm3, %v2543_v41, 0.0 }
 0xce2   : > { %v2542_v61 = vadd.f32 %v2520_v44, %v4014_v32  ;;  %v2545_v6 = vsel %vm690_vm3, %v2541_v59, 0.0  ;;  %v3527_v44 = vld [vmem:[%s4312_s7 + $0x28] sm:$0xff]  }
 0xce3   : > { %v2550_v3 = vsel %vm690_vm3, %v2544_v62, 0.0 }
 0xce4   : > { %v2546_v0 = vsel %vm690_vm3, %v2542_v61, 0.0 }
 0xce5   : > { %v2547_v7 = vadd.f32 %v2546_v0, %v2545_v6  ;;  %v3530_v6 = vld [vmem:[%s4314_s9 + $0x10] sm:$0xff]   ;;  %v2663_v0 = vpop.permute.xlu1 %2662 }
 0xce6   : > { %3487 = vmatprep.mubr.msk.bf16.mxu0 %vm1563_vm4, %v3530_v6 }
 0xce7   : > { %v2549_v2 = vadd.f32 %v2548_v1, %v2547_v7 }
 0xce9   : > { %v2551_v4 = vadd.f32 %v2550_v3, %v2549_v2  ;;  %v2673_v1 = vpop.permute.xlu1 %2672 }
 0xceb   : > { %v2552_v31 = vrot.slane %v2551_v4, 4 }
 0xced   : > { %v2553_v46 = vadd.f32 %v2552_v31, %v2551_v4 }
 0xcef   : > { %v2554_v18 = vrot.slane %v2553_v46, 2 }
 0xcf1   : > { %v2555_v8 = vadd.f32 %v2554_v18, %v2553_v46 }
 0xcf3   : > { %v2556_v33 = vrot.slane %v2555_v8, 1 }
 0xcf5   : > { %v2557_v54 = vadd.f32 %v2556_v33, %v2555_v8 }
 0xcf7   : > { %v2558_v32 = vmul.f32 0.03125, %v2557_v54  ;;  %v2683_v54 = vpop.permute.xlu1 %2682 }
 0xcf9   : > { %v2559_v28 = vsub.f32 %v2541_v59, %v2558_v32  ;;  %v2560_v9 = vsub.f32 %v2542_v61, %v2558_v32  ;;  %v2561_v48 = vsub.f32 %v2543_v41, %v2558_v32  ;;  %v2562_v34 = vsub.f32 %v2544_v62, %v2558_v32  ;;  %v3528_v41 = vld [vmem:[%s4312_s7 + $0x30] sm:$0xff]   ;;  %v3529_v61 = vld [vmem:[%s4312_s7 + $0x38] sm:$0xff]   ;;  %v2658_v62 = vpop.permute.xlu0 %2657 }
 0xcfb   : > { %v2563_v11 = vmul.f32 %v2559_v28, %v2559_v28  ;;  %v2564_v63 = vmul.f32 %v2560_v9, %v2560_v9  ;;  %v2565_v12 = vmul.f32 %v2561_v48, %v2561_v48  ;;  %v2566_v52 = vmul.f32 %v2562_v34, %v2562_v34 }
 0xcfd   : > { %v2567_v13 = vsel %vm690_vm3, %v2563_v11, 0.0  ;;  %v2568_v14 = vsel %vm690_vm3, %v2564_v63, 0.0  ;;  %v2570_v16 = vsel %vm690_vm3, %v2565_v12, 0.0  ;;  %v2572_v19 = vsel %vm690_vm3, %v2566_v52, 0.0  ;;  %v2668_v7 = vpop.permute.xlu0 %2667 }
 0xcfe   : > { %v2569_v15 = vadd.f32 %v2568_v14, %v2567_v13 }
 0xd00   : > { %v2571_v21 = vadd.f32 %v2570_v16, %v2569_v15  ;;  %v2693_v15 = vpop.permute.xlu1 %2692 }
 0xd01   : > { %v2678_v31 = vpop.permute.xlu0 %2677 }
 0xd02   : > { %v2573_v20 = vadd.f32 %v2572_v19, %v2571_v21 }
 0xd04   : > { %v2574_v22 = vrot.slane %v2573_v20, 4 }
 0xd05   : > { %v2688_v63 = vpop.permute.xlu0 %2687 }
 0xd06   : > { %v2575_v23 = vadd.f32 %v2574_v22, %v2573_v20 }
 0xd08   : > { %v2576_v24 = vrot.slane %v2575_v23, 2 }
 0xd0a   : > { %v2577_v10 = vadd.f32 %v2576_v24, %v2575_v23 }
 0xd0c   : > { %v2578_v25 = vrot.slane %v2577_v10, 1 }
 0xd0e   : > { %v2579_v26 = vadd.f32 %v2578_v25, %v2577_v10 }
 0xd10   : > { %v2580_v17 = vmul.f32 0.03125, %v2579_v26 }
 0xd12   : > { %v2581_v35 = vadd.f32 1e-05, %v2580_v17  ;;  %v2817_v17 = vpop.permute.xlu0 %2816 }
 0xd14   : > { %3568 = vrsqrt.f32 %v2581_v35  ;;  %v2822_v35 = vpop.permute.xlu1 %2821 }
 0xd1e   : > { %v3569_v47 = vpop.eup %3568 }
 0xd1f   : > { %v2584_v49 = vmul.f32 %v3569_v47, %v2560_v9  ;;  %v2583_v50 = vmul.f32 %v3569_v47, %v2559_v28  ;;  %v2585_v51 = vmul.f32 %v3569_v47, %v2561_v48  ;;  %v2586_v53 = vmul.f32 %v3569_v47, %v2562_v34 }
 0xd21   : > { %v2607_v55 = vmul.f32 %v2590_v27, %v2583_v50  ;;  %v2608_v56 = vmul.f32 %v2595_v30, %v2584_v49  ;;  %v2609_v40 = vmul.f32 %v2600_v39, %v2585_v51  ;;  %v2610_v57 = vmul.f32 %v2605_v45, %v2586_v53  ;;  %v3531_v30 = vld [vmem:[%s4314_s9 + $0x18] sm:$0xff]   ;;  %v2832_v50 = vpop.permute.xlu1 %2831 }
 0xd23   : > { %v4249_v43 = vadd.f32 %v2614_v37, %v2607_v55  ;;  %v4251_v58 = vadd.f32 %v2619_v38, %v2608_v56  ;;  %v4253_v42 = vadd.f32 %v2624_v36, %v2609_v40  ;;  %v4255_v5 = vadd.f32 %v2629_v29, %v2610_v57  ;;  %v2827_v38 = vpop.permute.xlu0 %2826 }
 0xd25   : > { %v2644_v59 = vpack.c.bf16 %v4251_v58, %v4249_v43  ;;  %v2645_v60 = vpack.c.bf16 %v4255_v5, %v4253_v42 }
 0xd27   : > { %3467 = vmatprep.subr.bf16.mxu1 %v2644_v59 }
 0xd28   : > { %3468 = vmatpush3.bf16.msra.mxu1 %v2644_v59 }
 0xd29   : > { %3469 = vmatprep.subr.bf16.mxu1 %v2645_v60 }
 0xd2c   : > { %3470 = vmatpush3.bf16.msra.mxu1 %v2645_v60 }
 0xd2f   : > { %3472 = vmatmul.mubr.msk.bf16.vlgmr.msra.gmra.mrb[56].mxu1 %vm562_vm0, %v3527_v44 }
 0xd30   : > { %3475 = vmatprep.mubr.msk.bf16.mxu1 %vm562_vm0, %v3528_v41 }
 0xd37   : > { %3476 = vmatmul.mubr.msk.bf16.gmra.mrb[60].mxu1 %vm562_vm0, %v3529_v61 }
 0xe02   : > { %v3473_v2 = vpop.f32.mrb[56].mxu1 }
 0xe03   : > { %v2770_v3 = vadd.f32 %v3473_v2, %v2668_v7  ;;  %v2761_v4 = vpop.f32.mrb[57].mxu1 }
 0xe04   : > { %v2762_v46 = vadd.f32 %v2761_v4, %v2658_v62  ;;  %v3474_v18 = vpop.f32.mrb[58].mxu1 }
 0xe05   : > { %v2773_v8 = vadd.f32 %v3474_v18, %v2673_v1  ;;  %v2764_v33 = vpop.f32.mrb[59].mxu1  ;;  %v2794_v28 = vmax.f32 %v2770_v3, 0.0 }
 0xe06   : > { %v2765_v32 = vadd.f32 %v2764_v33, %v2663_v0  ;;  %v2792_v48 = vmax.f32 %v2762_v46, 0.0 }
 0xe07   : > { %v2795_v9 = vmax.f32 %v2773_v8, 0.0 }
 0xe08   : > { %v2793_v34 = vmax.f32 %v2765_v32, 0.0 }
 0xe09   : > { %v2806_v11 = vpack.c.bf16 %v2795_v9, %v2794_v28 }
 0xe0a   : > { %v2805_v12 = vpack.c.bf16 %v2793_v34, %v2792_v48  ;;  %v3477_v52 = vpop.f32.mrb[60].mxu1 }
 0xe0b   : > { %v2786_v13 = vadd.f32 %v3477_v52, %v2688_v63  ;;  %v2777_v14 = vpop.f32.mrb[61].mxu1 }
 0xe0c   : > { %v2778_v16 = vadd.f32 %v2777_v14, %v2678_v31  ;;  %v3478_v21 = vpop.f32.mrb[62].mxu1  ;;  %3479 = vmatprep.subr.bf16.mxu0 %v2805_v12 }
 0xe0d   : > { %v2789_v19 = vadd.f32 %v3478_v21, %v2693_v15  ;;  %v2780_v20 = vpop.f32.mrb[63].mxu1  ;;  %3480 = vmatpush3.bf16.msra.mxu0 %v2805_v12  ;;  %v2798_v23 = vmax.f32 %v2786_v13, 0.0  ;;  %v2958_v15 = vpop.permute.xlu0 %2957 }
 0xe0e   : > { %v2781_v22 = vadd.f32 %v2780_v20, %v2683_v54  ;;  %3481 = vmatprep.subr.bf16.mxu0 %v2806_v11  ;;  %v2796_v10 = vmax.f32 %v2778_v16, 0.0  ;;  %v2963_v16 = vpop.permute.xlu1 %2962 }
 0xe0f   : > { %v2799_v24 = vmax.f32 %v2789_v19, 0.0 }
 0xe10   : > { %v2797_v25 = vmax.f32 %v2781_v22, 0.0 }
 0xe11   : > { %v2808_v26 = vpack.c.bf16 %v2799_v24, %v2798_v23  ;;  %3482 = vmatpush3.bf16.msra.mxu0 %v2806_v11  ;;  %v2968_v20 = vpop.permute.xlu0 %2967 }
 0xe12   : > { %v2807_v27 = vpack.c.bf16 %v2797_v25, %v2796_v10  ;;  %v2973_v22 = vpop.permute.xlu1 %2972 }
 0xe14   : > { %3483 = vmatprep.subr.bf16.mxu0 %v2807_v27 }
 0xe15   : > { %3484 = vmatpush3.bf16.msra.mxu0 %v2807_v27  ;;  %v2982_v23 = vpop.permute.xlu0 %2981 }
 0xe16   : > { %3485 = vmatprep.subr.bf16.mxu0 %v2808_v26  ;;  %v2987_v24 = vpop.permute.xlu1 %2986 }
 0xe19   : > { %3486 = vmatpush3.bf16.msra.mxu0 %v2808_v26 }
 0xe1c   : > { %3488 = vmatmul.mubr.msk.bf16.vlgmr.msra.gmra.mrb[52].mxu0 %vm1563_vm4, %v3531_v30 }
 0xeef   : > { %v3489_v37 = vpop.f32.mrb[52].mxu0 }
 0xef0   : > { %v2884_v39 = vpop.f32.mrb[53].mxu0  ;;  %v2893_v45 = vadd.f32 %v3489_v37, %v2827_v38 }
 0xef1   : > { %v2885_v47 = vadd.f32 %v2884_v39, %v2817_v17  ;;  %v3490_v49 = vpop.f32.mrb[54].mxu0  ;;  %v2992_v39 = vpop.permute.xlu0 %2991 }
 0xef2   : > { %v2887_v51 = vpop.f32.mrb[55].mxu0  ;;  %v2896_v55 = vadd.f32 %v3490_v49, %v2832_v50  ;;  %v2911_v40 = vadd.f32 %v2893_v45, %v4253_v42  ;;  %v2997_v45 = vpop.permute.xlu1 %2996 }
 0xef3   : > { %v2909_v53 = vadd.f32 %v2885_v47, %v4249_v43  ;;  %v2888_v56 = vadd.f32 %v2887_v51, %v2822_v35 }
 0xef4   : > { %v2912_v29 = vadd.f32 %v2896_v55, %v4255_v5  ;;  %v2916_v44 = vsel %vm690_vm3, %v2911_v40, 0.0 }
 0xef5   : > { %v2910_v57 = vadd.f32 %v2888_v56, %v4251_v58  ;;  %v2913_v36 = vsel %vm690_vm3, %v2909_v53, 0.0 }
 0xef6   : > { %v2918_v61 = vsel %vm690_vm3, %v2912_v29, 0.0 }
 0xef7   : > { %v2914_v59 = vsel %vm690_vm3, %v2910_v57, 0.0 }
 0xef8   : > { %v2915_v60 = vadd.f32 %v2914_v59, %v2913_v36 }
 0xefa   : > { %v2917_v41 = vadd.f32 %v2916_v44, %v2915_v60 }
 0xefc   : > { %v2919_v6 = vadd.f32 %v2918_v61, %v2917_v41 }
 0xefe   : > { %v2920_v43 = vrot.slane %v2919_v6, 4 }
 0xf00   : > { %v2921_v62 = vadd.f32 %v2920_v43, %v2919_v6 }
 0xf02   : > { %v2922_v0 = vrot.slane %v2921_v62, 2 }
 0xf04   : > { %v2923_v7 = vadd.f32 %v2922_v0, %v2921_v62 }
 0xf06   : > { %v2924_v42 = vrot.slane %v2923_v7, 1 }
 0xf08   : > { %v2925_v1 = vadd.f32 %v2924_v42, %v2923_v7 }
 0xf0a   : > { %v2926_v58 = vmul.f32 0.03125, %v2925_v1 }
 0xf0c   : > { %v2927_v2 = vsub.f32 %v2909_v53, %v2926_v58  ;;  %v2928_v3 = vsub.f32 %v2910_v57, %v2926_v58  ;;  %v2929_v4 = vsub.f32 %v2911_v40, %v2926_v58  ;;  %v2930_v5 = vsub.f32 %v2912_v29, %v2926_v58 }
 0xf0e   : > { %v2931_v31 = vmul.f32 %v2927_v2, %v2927_v2  ;;  %v2932_v46 = vmul.f32 %v2928_v3, %v2928_v3  ;;  %v2933_v18 = vmul.f32 %v2929_v4, %v2929_v4  ;;  %v2934_v8 = vmul.f32 %v2930_v5, %v2930_v5 }
 0xf10   : > { %v2935_v33 = vsel %vm690_vm3, %v2931_v31, 0.0  ;;  %v2936_v54 = vsel %vm690_vm3, %v2932_v46, 0.0  ;;  %v2938_v28 = vsel %vm690_vm3, %v2933_v18, 0.0  ;;  %v2940_v48 = vsel %vm690_vm3, %v2934_v8, 0.0 }
 0xf11   : > { %v2937_v32 = vadd.f32 %v2936_v54, %v2935_v33 }
 0xf13   : > { %v2939_v9 = vadd.f32 %v2938_v28, %v2937_v32 }
 0xf15   : > { %v2941_v34 = vadd.f32 %v2940_v48, %v2939_v9 }
 0xf17   : > { %v2942_v11 = vrot.slane %v2941_v34, 4 }
 0xf19   : > { %v2943_v63 = vadd.f32 %v2942_v11, %v2941_v34 }
 0xf1b   : > { %v2944_v12 = vrot.slane %v2943_v63, 2 }
 0xf1d   : > { %v2945_v52 = vadd.f32 %v2944_v12, %v2943_v63 }
 0xf1f   : > { %v2946_v13 = vrot.slane %v2945_v52, 1 }
 0xf21   : > { %v2947_v14 = vadd.f32 %v2946_v13, %v2945_v52 }
 0xf23   : > { %v2948_v21 = vmul.f32 0.03125, %v2947_v14 }
 0xf25   : > { %v2949_v19 = vadd.f32 1e-05, %v2948_v21 }
 0xf27   : > { %3570 = vrsqrt.f32 %v2949_v19 }
 0xf31   : > { %v3571_v10 = vpop.eup %3570 }
 0xf32   : > { %v2951_v25 = vmul.f32 %v3571_v10, %v2927_v2  ;;  %v2952_v26 = vmul.f32 %v3571_v10, %v2928_v3  ;;  %v2953_v27 = vmul.f32 %v3571_v10, %v2929_v4  ;;  %v2954_v30 = vmul.f32 %v3571_v10, %v2930_v5 }
 0xf34   : > { %v2975_v17 = vmul.f32 %v2958_v15, %v2951_v25  ;;  %v2976_v35 = vmul.f32 %v2963_v16, %v2952_v26  ;;  %v2977_v37 = vmul.f32 %v2968_v20, %v2953_v27  ;;  %v2978_v38 = vmul.f32 %v2973_v22, %v2954_v30 }
 0xf36   : > { %v2999_v47 = vadd.f32 %v2982_v23, %v2975_v17  ;;  %v3000_v49 = vadd.f32 %v2987_v24, %v2976_v35  ;;  %v3001_v50 = vadd.f32 %v2992_v39, %v2977_v37  ;;  %v3002_v51 = vadd.f32 %v2997_v45, %v2978_v38 }
 0xf38   : > { %3003 = vst.msk [vmem:[%s440_s24] sm:$0xff] %vm690_vm3, %v2999_v47  ;;  %3004 = vst.msk [vmem:[%s440_s24 + $0x8] sm:$0xff] %vm690_vm3, %v3000_v49 }
 0xf39   : > { %3005 = vst.msk [vmem:[%s440_s24 + $0x10] sm:$0xff] %vm690_vm3, %v3001_v50  ;;  %3006 = vst.msk [vmem:[%s440_s24 + $0x18] sm:$0xff] %vm690_vm3, %v3002_v51 }
 0xf3a PF: > { %s23_s25 = sadd.s32 1, %s3578_s25  }
 0xf3b   : > { %p20_p4 = scmp.ge.s32.totalorder %s23_s25, 4  }
 0xf3d   :  { %22 = sbr.rel (!%p20_p4) target bundleno = 1 (0x1), region = 114 }

</bundles_post_ra>
